<compile_context>
chip_gen: v7x
topology: tpu7x:2x2x1
jax: 0.10.0
libtpu: 0.0.40
codegen_flags: <defaults>
</compile_context>

<pallas_src>
import math

import jax
import jax.numpy as jnp
from jax.experimental import pallas as pl
from jax.experimental.pallas import tpu as pltpu

# ---- problem sizes (small, deterministic) ----
B = 2            # batch
T = 8            # target sequence length
S = 16           # memory (encoder) sequence length
D_MODEL = 32     # d_model
NUM_HEADS = 4
HEAD_DIM = D_MODEL // NUM_HEADS
FF_HIDDEN = 4 * D_MODEL        # Expert expansion_factor=4  -> 128
EPS = 1e-5
SCALE = 1.0 / (HEAD_DIM ** 0.5)

LANE = 128                     # vreg lane width == per-matrix padded tile width
BT = B * T                     # 16 stacked target rows
BS = B * S                     # 32 stacked memory rows
PACK_W = LANE                  # lane-dense packed-output width
NEG_INF = -1e30

# 128-aligned column offsets into the first-stage weight/bias slab ((in, out) layout)
SA_Q0, SA_K0, SA_V0 = 0 * LANE, 1 * LANE, 2 * LANE
CA_Q0, CA_K0, CA_V0 = 3 * LANE, 4 * LANE, 5 * LANE
FF1_0 = 6 * LANE
W_IN_COLS = 7 * LANE

# power-of-two shift constants (used instead of vector integer // and %)
assert B & (B - 1) == 0 and T & (T - 1) == 0 and S & (S - 1) == 0
assert BT & (BT - 1) == 0 and HEAD_DIM & (HEAD_DIM - 1) == 0
_LOG2_BT = BT.bit_length() - 1
_LOG2_T = T.bit_length() - 1
_LOG2_HD = HEAD_DIM.bit_length() - 1


# ----------------------------- in-kernel math helpers -----------------------------
def _layer_norm(x, g, b):
    """Single-pass LayerNorm: mean and mean-of-squares computed in one sweep."""
    mu = jnp.mean(x, axis=-1, keepdims=True)
    ms = jnp.mean(x * x, axis=-1, keepdims=True)
    var = ms - mu * mu
    return (x - mu) * jax.lax.rsqrt(var + EPS) * g + b


def _softmax(s):
    m = jnp.max(s, axis=-1, keepdims=True)
    e = jnp.exp(s - m)
    # exact reciprocal: approx=True (~2^-12 rel err) is borderline vs the 2e-4 tolerance.
    return e * pl.reciprocal(jnp.sum(e, axis=-1, keepdims=True), approx=False)


def _stacked_mha(q_full, k_full, v_full, kv_len):
    """Stacked multi-head attention over the whole (flattened) batch.

    q_full: (BT, LANE)        query projection; head h lives in lanes [h*HEAD_DIM,(h+1)*HEAD_DIM),
                              lanes >= D_MODEL are zero.
    k_full, v_full: (B*kv_len, LANE) key / value projections, same lane layout.
    Returns:
      o  : (BT, LANE)  concat-of-heads attention output (lanes >= D_MODEL are zero)
      w  : (BT, kv_len) head-averaged attention weights, per-batch block folded together
    """
    nq = NUM_HEADS * BT
    nk = B * kv_len
    log2_kv = kv_len.bit_length() - 1
    assert kv_len & (kv_len - 1) == 0

    # per-head lane selector: row block h of the stack keeps only lanes of head h
    row = jax.lax.broadcasted_iota(jnp.int32, (nq, LANE), 0)
    lane = jax.lax.broadcasted_iota(jnp.int32, (nq, LANE), 1)
    head = row >> _LOG2_BT                       # r // BT
    head_sel = (lane >> _LOG2_HD) == head        # lane // HEAD_DIM == head (pad lanes excluded)

    # H sublane-stacked copies of q, lane-masked to their own head; softmax scale folded in.
    q_stack = jnp.concatenate([q_full] * NUM_HEADS, axis=0) * jnp.where(head_sel, SCALE, 0.0)

    # one big score matmul: contraction depth LANE=128 instead of HEAD_DIM=8
    s = jax.lax.dot_general(q_stack, k_full, (((1,), (1,)), ((), ())),
                            preferred_element_type=jnp.float32)          # (nq, nk)

    # mask cross-batch entries to -inf BEFORE the softmax
    rq = jax.lax.broadcasted_iota(jnp.int32, (nq, nk), 0)
    kq = jax.lax.broadcasted_iota(jnp.int32, (nq, nk), 1)
    qb = (rq >> _LOG2_T) & (B - 1)               # (r % BT) // T  -> query batch
    kb = kq >> log2_kv                           # c // kv_len    -> key batch
    s = jnp.where(qb == kb, s, NEG_INF)

    p = _softmax(s)                              # (nq, nk); cross-batch entries exactly 0

    # one prob @ V matmul, then recover concat-of-heads with lane mask + sublane-block sum
    o_stack = jnp.dot(p, v_full, preferred_element_type=jnp.float32)     # (nq, LANE)
    o_stack = o_stack * jnp.where(head_sel, 1.0, 0.0)

    o = jnp.zeros((BT, LANE), jnp.float32)
    p_avg = jnp.zeros((BT, nk), jnp.float32)
    for h in range(NUM_HEADS):                   # static, sublane-aligned slices (multiples of 16)
        o = o + o_stack[h * BT:(h + 1) * BT]
        p_avg = p_avg + p[h * BT:(h + 1) * BT]
    p_avg = p_avg * (1.0 / NUM_HEADS)

    # fold the (exactly zero) off-batch key blocks down to one (BT, kv_len) slab
    w = jnp.zeros((BT, kv_len), jnp.float32)
    for b in range(B):
        w = w + p_avg[:, b * kv_len:(b + 1) * kv_len]
    return o, w


# ----------------------------------- Pallas kernel -----------------------------------
def decoder_layer_kernel(tgt_ref, mem_ref, w_in_ref, b_in_ref, w_out_ref, aux_ref, out_ref):
    aux = aux_ref[...]       # (10, D): ln1_g, ln1_b, ln2_g, ln2_b, ln3_g, ln3_b, sa_bo, ca_bo, ff_b2, pad
    x = tgt_ref[...]         # (BT, D)
    mem = mem_ref[...]       # (BS, D)

    # ---------------- self attention (pre-norm) ----------------
    xn = _layer_norm(x, aux[0:1], aux[1:2])
    qkv = (jnp.dot(xn, w_in_ref[:, SA_Q0:SA_V0 + LANE], preferred_element_type=jnp.float32)
           + b_in_ref[:, SA_Q0:SA_V0 + LANE])                                       # (BT, 3*LANE)
    o_sa, sa_w = _stacked_mha(qkv[:, 0:LANE], qkv[:, LANE:2 * LANE],
                              qkv[:, 2 * LANE:3 * LANE], T)
    x = x + jnp.dot(o_sa, w_out_ref[0], preferred_element_type=jnp.float32) + aux[6:7]

    # ---------------- cross attention (pre-norm; keys/values = raw memory) ----------------
    xn = _layer_norm(x, aux[2:3], aux[3:4])
    q = (jnp.dot(xn, w_in_ref[:, CA_Q0:CA_Q0 + LANE], preferred_element_type=jnp.float32)
         + b_in_ref[:, CA_Q0:CA_Q0 + LANE])                                          # (BT, LANE)
    kv = (jnp.dot(mem, w_in_ref[:, CA_K0:CA_V0 + LANE], preferred_element_type=jnp.float32)
          + b_in_ref[:, CA_K0:CA_V0 + LANE])                                         # (BS, 2*LANE)
    o_ca, ca_w = _stacked_mha(q, kv[:, 0:LANE], kv[:, LANE:2 * LANE], S)
    x = x + jnp.dot(o_ca, w_out_ref[1], preferred_element_type=jnp.float32) + aux[7:8]

    # ---------------- feed forward (Expert) (pre-norm) ----------------
    xn = _layer_norm(x, aux[4:5], aux[5:6])
    h = (jnp.dot(xn, w_in_ref[:, FF1_0:FF1_0 + LANE], preferred_element_type=jnp.float32)
         + b_in_ref[:, FF1_0:FF1_0 + LANE])                                          # (BT, FF_HIDDEN)
    h = jax.nn.gelu(h, approximate=True)
    x = x + jnp.dot(h, w_out_ref[2], preferred_element_type=jnp.float32) + aux[8:9]

    # ------------- lane-dense packed output: [x | sa_w | ca_w | zero pad] (BT, 128) -------------
    pad = jnp.zeros((BT, PACK_W - D_MODEL - T - S), jnp.float32)
    out_ref[...] = jnp.concatenate([x, sa_w, ca_w, pad], axis=-1)


# ----------------------------------- wrapper -----------------------------------
def transformer_decoder_layer(tgt, memory, w_in, b_in, w_out, aux):
    b, t, d = tgt.shape
    s = memory.shape[1]

    # flatten batch*seq in the wrapper (free XLA reshape) so the kernel works on 2-D slabs
    tgt2d = tgt.reshape(b * t, d)
    mem2d = memory.reshape(b * s, d)

    m, mk = b * t, b * s
    matmul_flops = 2 * (
        m * d * 3 * LANE              # fused self-attn QKV projection
        + m * d * LANE                # cross-attn Q projection
        + mk * d * 2 * LANE           # cross-attn fused K|V projection
        + m * d * FF_HIDDEN           # FFN first matmul
        + NUM_HEADS * m * LANE * m    # self-attn scores
        + NUM_HEADS * m * m * LANE    # self-attn prob @ V
        + NUM_HEADS * m * LANE * mk   # cross-attn scores
        + NUM_HEADS * m * mk * LANE   # cross-attn prob @ V
        + 3 * m * LANE * d            # self/cross out-proj + FFN second matmul
    )
    cost = pl.CostEstimate(
        flops=int(matmul_flops),
        transcendentals=int(NUM_HEADS * m * (m + mk) + m * FF_HIDDEN),
        bytes_accessed=int(4 * (tgt2d.size + mem2d.size + w_in.size + b_in.size
                                + w_out.size + aux.size + m * PACK_W)),
    )

    packed = pl.pallas_call(
        decoder_layer_kernel,
        out_shape=jax.ShapeDtypeStruct((b * t, PACK_W), jnp.float32),
        grid=(1,),                                   # single grid step: whole problem at once
        in_specs=[
            pl.BlockSpec((b * t, d), lambda i: (0, 0)),         # tgt (flattened)
            pl.BlockSpec((b * s, d), lambda i: (0, 0)),         # memory (flattened)
            pl.BlockSpec(w_in.shape, lambda i: (0, 0)),         # first-stage weights (D, 7*128)
            pl.BlockSpec(b_in.shape, lambda i: (0, 0)),         # first-stage biases  (1, 7*128)
            pl.BlockSpec(w_out.shape, lambda i: (0, 0, 0)),     # out-proj / FFN-W2 stack (3,128,D)
            pl.BlockSpec(aux.shape, lambda i: (0, 0)),          # LN params + out-proj biases
        ],
        out_specs=pl.BlockSpec((b * t, PACK_W), lambda i: (0, 0)),
        compiler_params=pltpu.CompilerParams(dimension_semantics=("arbitrary",)),
        cost_estimate=cost,
    )(tgt2d, mem2d, w_in, b_in, w_out, aux)

    out = packed[:, :d].reshape(b, t, d)
    sa_w = packed[:, d:d + t].reshape(b, t, t)
    ca_w = packed[:, d + t:d + t + s].reshape(b, t, s)
    return out, sa_w, ca_w


# ----------------------------------- parameter packing -----------------------------------
def pack_params(p):
    """Pack the 28 raw parameter arrays into 4 lane/tile-aligned slabs."""
    d = D_MODEL
    zc = jnp.zeros((d, LANE - d), jnp.float32)
    zb = jnp.zeros((1, LANE - d), jnp.float32)
    zr = jnp.zeros((LANE - d, d), jnp.float32)

    def pad_cols(w):          # (d, d) -> (d, 128): each matrix in its own 128-lane tile
        return jnp.concatenate([w, zc], axis=1)

    def pad_bias(bv):         # (1, d) -> (1, 128)
        return jnp.concatenate([bv, zb], axis=1)

    def pad_rows(w):          # (d, d) -> (128, d): contraction input is a 128-lane activation
        return jnp.concatenate([w, zr], axis=0)

    w_in = jnp.concatenate([pad_cols(p['sa_wq']), pad_cols(p['sa_wk']), pad_cols(p['sa_wv']),
                            pad_cols(p['ca_wq']), pad_cols(p['ca_wk']), pad_cols(p['ca_wv']),
                            p['ff_w1']], axis=1)                              # (D, 7*128)
    b_in = jnp.concatenate([pad_bias(p['sa_bq']), pad_bias(p['sa_bk']), pad_bias(p['sa_bv']),
                            pad_bias(p['ca_bq']), pad_bias(p['ca_bk']), pad_bias(p['ca_bv']),
                            p['ff_b1']], axis=1)                              # (1, 7*128)
    w_out = jnp.stack([pad_rows(p['sa_wo']), pad_rows(p['ca_wo']), p['ff_w2']], axis=0)  # (3,128,D)
    aux = jnp.concatenate([p['ln1_g'], p['ln1_b'], p['ln2_g'], p['ln2_b'],
                           p['ln3_g'], p['ln3_b'], p['sa_bo'], p['ca_bo'], p['ff_b2'],
                           jnp.zeros((1, d), jnp.float32)], axis=0)           # (10, D)
    assert w_in.shape == (D_MODEL, W_IN_COLS) and b_in.shape == (1, W_IN_COLS)
    assert w_out.shape == (3, LANE, D_MODEL) and aux.shape == (10, D_MODEL)
    return w_in, b_in, w_out, aux


# ----------------------------------- pure-JAX reference -----------------------------------
def reference(tgt, memory, p):
    d = D_MODEL

    def ln(v, g, b):
        mu = jnp.mean(v, axis=-1, keepdims=True)
        var = jnp.mean(jnp.square(v - mu), axis=-1, keepdims=True)
        return (v - mu) * jax.lax.rsqrt(var + EPS) * g + b

    def mha(q_in, kv_in, wq, bq, wk, bk, wv, bv, wo, bo):
        t = q_in.shape[0]
        s = kv_in.shape[0]
        q = q_in @ wq + bq
        k = kv_in @ wk + bk
        v = kv_in @ wv + bv
        qh = q.reshape(t, NUM_HEADS, HEAD_DIM).transpose(1, 0, 2)
        kh = k.reshape(s, NUM_HEADS, HEAD_DIM).transpose(1, 0, 2)
        vh = v.reshape(s, NUM_HEADS, HEAD_DIM).transpose(1, 0, 2)
        scores = jnp.einsum('htd,hsd->hts', qh, kh) * SCALE
        pw = jax.nn.softmax(scores, axis=-1)
        o = jnp.einsum('hts,hsd->htd', pw, vh).transpose(1, 0, 2).reshape(t, d)
        return o @ wo + bo, jnp.mean(pw, axis=0)

    def one(x, mem):
        xn = ln(x, p['ln1_g'], p['ln1_b'])
        sa, sw = mha(xn, xn, p['sa_wq'], p['sa_bq'], p['sa_wk'], p['sa_bk'],
                     p['sa_wv'], p['sa_bv'], p['sa_wo'], p['sa_bo'])
        x = x + sa
        xn = ln(x, p['ln2_g'], p['ln2_b'])
        ca, cw = mha(xn, mem, p['ca_wq'], p['ca_bq'], p['ca_wk'], p['ca_bk'],
                     p['ca_wv'], p['ca_bv'], p['ca_wo'], p['ca_bo'])
        x = x + ca
        xn = ln(x, p['ln3_g'], p['ln3_b'])
        hdn = jax.nn.gelu(xn @ p['ff_w1'] + p['ff_b1'], approximate=True)
        x = x + (hdn @ p['ff_w2'] + p['ff_b2'])
        return x, sw, cw

    return jax.vmap(one, in_axes=(0, 0))(tgt, memory)


# ----------------------------------- main -----------------------------------
if __name__ == "__main__":
    key = jax.random.PRNGKey(0)
    keys = jax.random.split(key, 40)
    _k = iter(keys)

    def rand(shape, scale=0.05):
        return (scale * jax.random.normal(next(_k), shape)).astype(jnp.float32)

    tgt = rand((B, T, D_MODEL), scale=1.0)
    memory = rand((B, S, D_MODEL), scale=1.0)

    # per-module parameters (weights in (in, out) layout)
    params = dict(
        sa_wq=rand((D_MODEL, D_MODEL)), sa_wk=rand((D_MODEL, D_MODEL)),
        sa_wv=rand((D_MODEL, D_MODEL)), sa_wo=rand((D_MODEL, D_MODEL)),
        sa_bq=rand((1, D_MODEL), 0.02), sa_bk=rand((1, D_MODEL), 0.02),
        sa_bv=rand((1, D_MODEL), 0.02), sa_bo=rand((1, D_MODEL), 0.02),
        ca_wq=rand((D_MODEL, D_MODEL)), ca_wk=rand((D_MODEL, D_MODEL)),
        ca_wv=rand((D_MODEL, D_MODEL)), ca_wo=rand((D_MODEL, D_MODEL)),
        ca_bq=rand((1, D_MODEL), 0.02), ca_bk=rand((1, D_MODEL), 0.02),
        ca_bv=rand((1, D_MODEL), 0.02), ca_bo=rand((1, D_MODEL), 0.02),
        ff_w1=rand((D_MODEL, FF_HIDDEN)), ff_b1=rand((1, FF_HIDDEN), 0.02),
        ff_w2=rand((FF_HIDDEN, D_MODEL)), ff_b2=rand((1, D_MODEL), 0.02),
        ln1_g=1.0 + rand((1, D_MODEL), 0.02), ln1_b=rand((1, D_MODEL), 0.02),
        ln2_g=1.0 + rand((1, D_MODEL), 0.02), ln2_b=rand((1, D_MODEL), 0.02),
        ln3_g=1.0 + rand((1, D_MODEL), 0.02), ln3_b=rand((1, D_MODEL), 0.02),
    )

    w_in, b_in, w_out, aux = pack_params(params)

    out, sa_w, ca_w = transformer_decoder_layer(tgt, memory, w_in, b_in, w_out, aux)
    jax.block_until_ready((out, sa_w, ca_w))

    ref_out, ref_sa, ref_ca = reference(tgt, memory, params)
    assert jnp.allclose(out, ref_out, atol=2e-4, rtol=2e-4), "output mismatch"
    assert jnp.allclose(sa_w, ref_sa, atol=2e-4, rtol=2e-4), "self-attn weights mismatch"
    assert jnp.allclose(ca_w, ref_ca, atol=2e-4, rtol=2e-4), "cross-attn weights mismatch"

    print("KERNEL_OK")
</pallas_src>

<mosaic_0001>
module attributes {stable_mosaic.version = 11 : i64} {
  func.func @decoder_layer_kernel(%arg0: i32, %arg1: memref<16x32xf32, #tpu.memory_space<vmem>>, %arg2: memref<32x32xf32, #tpu.memory_space<vmem>>, %arg3: memref<32x896xf32, #tpu.memory_space<vmem>>, %arg4: memref<1x896xf32, #tpu.memory_space<vmem>>, %arg5: memref<3x128x32xf32, #tpu.memory_space<vmem>>, %arg6: memref<10x32xf32, #tpu.memory_space<vmem>>, %arg7: memref<16x128xf32, #tpu.memory_space<vmem>>) attributes {dimension_semantics = [#tpu.dimension_semantics<arbitrary>], iteration_bounds = array<i64: 1>, scalar_prefetch = 0 : i64, scratch_operands = 0 : i64, tpu.core_type = #tpu.core_type<tc>, window_params = [{pipeline_mode = #tpu.pipeline_mode<synchronous>, transform_indices = @transform_0, window_bounds = array<i64: 16, 32>}, {pipeline_mode = #tpu.pipeline_mode<synchronous>, transform_indices = @transform_1, window_bounds = array<i64: 32, 32>}, {pipeline_mode = #tpu.pipeline_mode<synchronous>, transform_indices = @transform_2, window_bounds = array<i64: 32, 896>}, {pipeline_mode = #tpu.pipeline_mode<synchronous>, transform_indices = @transform_3, window_bounds = array<i64: 1, 896>}, {pipeline_mode = #tpu.pipeline_mode<synchronous>, transform_indices = @transform_4, window_bounds = array<i64: 3, 128, 32>}, {pipeline_mode = #tpu.pipeline_mode<synchronous>, transform_indices = @transform_5, window_bounds = array<i64: 10, 32>}, {pipeline_mode = #tpu.pipeline_mode<synchronous>, transform_indices = @transform_6, window_bounds = array<i64: 16, 128>}]} {
    %c0 = arith.constant 0 : index
    %c0_0 = arith.constant 0 : index
    %0 = vector.load %arg6[%c0, %c0_0] : memref<10x32xf32, #tpu.memory_space<vmem>>, vector<10x32xf32>
    %c0_1 = arith.constant 0 : index
    %c0_2 = arith.constant 0 : index
    %1 = vector.load %arg1[%c0_1, %c0_2] : memref<16x32xf32, #tpu.memory_space<vmem>>, vector<16x32xf32>
    %c0_3 = arith.constant 0 : index
    %c0_4 = arith.constant 0 : index
    %2 = vector.load %arg2[%c0_3, %c0_4] : memref<32x32xf32, #tpu.memory_space<vmem>>, vector<32x32xf32>
    %3 = vector.extract_strided_slice %0 {offsets = [0, 0], sizes = [1, 32], strides = [1, 1]} : vector<10x32xf32> to vector<1x32xf32>
    %4 = vector.extract_strided_slice %0 {offsets = [1, 0], sizes = [1, 32], strides = [1, 1]} : vector<10x32xf32> to vector<1x32xf32>
    %cst = arith.constant dense<0.000000e+00> : vector<16xf32>
    %5 = vector.multi_reduction <add>, %1, %cst [1] : vector<16x32xf32> to vector<16xf32>
    %6 = vector.shape_cast %5 : vector<16xf32> to vector<16x1xf32>
    %cst_5 = arith.constant 3.200000e+01 : f32
    %7 = vector.broadcast %cst_5 : f32 to vector<16x1xf32>
    %8 = arith.divf %6, %7 : vector<16x1xf32>
    %9 = arith.mulf %1, %1 : vector<16x32xf32>
    %cst_6 = arith.constant dense<0.000000e+00> : vector<16xf32>
    %10 = vector.multi_reduction <add>, %9, %cst_6 [1] : vector<16x32xf32> to vector<16xf32>
    %11 = vector.shape_cast %10 : vector<16xf32> to vector<16x1xf32>
    %cst_7 = arith.constant 3.200000e+01 : f32
    %12 = vector.broadcast %cst_7 : f32 to vector<16x1xf32>
    %13 = arith.divf %11, %12 : vector<16x1xf32>
    %14 = arith.mulf %8, %8 : vector<16x1xf32>
    %15 = arith.subf %13, %14 : vector<16x1xf32>
    %16 = vector.broadcast %8 : vector<16x1xf32> to vector<16x32xf32>
    %17 = arith.subf %1, %16 : vector<16x32xf32>
    %cst_8 = arith.constant 9.99999974E-6 : f32
    %18 = vector.broadcast %cst_8 : f32 to vector<16x1xf32>
    %19 = arith.addf %15, %18 : vector<16x1xf32>
    %20 = math.rsqrt %19 : vector<16x1xf32>
    %21 = vector.broadcast %20 : vector<16x1xf32> to vector<16x32xf32>
    %22 = arith.mulf %17, %21 : vector<16x32xf32>
    %23 = vector.broadcast %3 : vector<1x32xf32> to vector<16x32xf32>
    %24 = arith.mulf %22, %23 : vector<16x32xf32>
    %25 = vector.broadcast %4 : vector<1x32xf32> to vector<16x32xf32>
    %26 = arith.addf %24, %25 : vector<16x32xf32>
    %c0_9 = arith.constant 0 : index
    %c0_10 = arith.constant 0 : index
    %27 = vector.load %arg3[%c0_9, %c0_10] : memref<32x896xf32, #tpu.memory_space<vmem>>, vector<32x384xf32>
    %cst_11 = arith.constant dense<0.000000e+00> : vector<16x384xf32>
    %28 = tpu.matmul %26, %27, %cst_11 {dimension_numbers = #tpu.dot_dimension_numbers<[1], [0], [0], [1], [0, 0, 1, 1], [], []>} : vector<16x32xf32>, vector<32x384xf32>, vector<16x384xf32> -> vector<16x384xf32>
    %c0_12 = arith.constant 0 : index
    %c0_13 = arith.constant 0 : index
    %29 = vector.load %arg4[%c0_12, %c0_13] : memref<1x896xf32, #tpu.memory_space<vmem>>, vector<1x384xf32>
    %30 = vector.broadcast %29 : vector<1x384xf32> to vector<16x384xf32>
    %31 = arith.addf %28, %30 : vector<16x384xf32>
    %32 = vector.extract_strided_slice %31 {offsets = [0, 0], sizes = [16, 128], strides = [1, 1]} : vector<16x384xf32> to vector<16x128xf32>
    %33 = vector.extract_strided_slice %31 {offsets = [0, 128], sizes = [16, 128], strides = [1, 1]} : vector<16x384xf32> to vector<16x128xf32>
    %34 = vector.extract_strided_slice %31 {offsets = [0, 256], sizes = [16, 128], strides = [1, 1]} : vector<16x384xf32> to vector<16x128xf32>
    %35 = tpu.iota {dimensions = array<i32: 0>} : vector<64x128xi32>
    %36 = tpu.iota {dimensions = array<i32: 1>} : vector<64x128xi32>
    %c4_i32 = arith.constant 4 : i32
    %37 = vector.broadcast %c4_i32 : i32 to vector<64x128xi32>
    %38 = arith.shrsi %35, %37 : vector<64x128xi32>
    %c3_i32 = arith.constant 3 : i32
    %39 = vector.broadcast %c3_i32 : i32 to vector<64x128xi32>
    %40 = arith.shrsi %36, %39 : vector<64x128xi32>
    %41 = arith.cmpi eq, %40, %38 : vector<64x128xi32>
    %42 = tpu.concatenate %32, %32, %32, %32 in 0 : vector<16x128xf32>, vector<16x128xf32>, vector<16x128xf32>, vector<16x128xf32> -> vector<64x128xf32>
    %cst_14 = arith.constant 0.353553385 : f32
    %cst_15 = arith.constant 0.000000e+00 : f32
    %43 = vector.broadcast %cst_14 : f32 to vector<64x128xf32>
    %44 = vector.broadcast %cst_15 : f32 to vector<64x128xf32>
    %45 = arith.select %41, %43, %44 : vector<64x128xi1>, vector<64x128xf32>
    %46 = arith.mulf %42, %45 : vector<64x128xf32>
    %cst_16 = arith.constant dense<0.000000e+00> : vector<64x16xf32>
    %47 = tpu.matmul %46, %33, %cst_16 {dimension_numbers = #tpu.dot_dimension_numbers<[1], [1], [0], [0], [0, 0, 1, 0], [], []>} : vector<64x128xf32>, vector<16x128xf32>, vector<64x16xf32> -> vector<64x16xf32>
    %48 = tpu.iota {dimensions = array<i32: 0>} : vector<64x16xi32>
    %49 = tpu.iota {dimensions = array<i32: 1>} : vector<64x16xi32>
    %c3_i32_17 = arith.constant 3 : i32
    %50 = vector.broadcast %c3_i32_17 : i32 to vector<64x16xi32>
    %51 = arith.shrsi %48, %50 : vector<64x16xi32>
    %c1_i32 = arith.constant 1 : i32
    %52 = vector.broadcast %c1_i32 : i32 to vector<64x16xi32>
    %53 = arith.andi %51, %52 : vector<64x16xi32>
    %c3_i32_18 = arith.constant 3 : i32
    %54 = vector.broadcast %c3_i32_18 : i32 to vector<64x16xi32>
    %55 = arith.shrsi %49, %54 : vector<64x16xi32>
    %56 = arith.cmpi eq, %53, %55 : vector<64x16xi32>
    %cst_19 = arith.constant -1.000000e+30 : f32
    %57 = vector.broadcast %cst_19 : f32 to vector<64x16xf32>
    %58 = arith.select %56, %47, %57 : vector<64x16xi1>, vector<64x16xf32>
    %cst_20 = arith.constant dense<0xFF800000> : vector<64xf32>
    %59 = vector.multi_reduction <maximumf>, %58, %cst_20 [1] : vector<64x16xf32> to vector<64xf32>
    %60 = vector.shape_cast %59 : vector<64xf32> to vector<64x1xf32>
    %61 = vector.broadcast %60 : vector<64x1xf32> to vector<64x16xf32>
    %62 = arith.subf %58, %61 : vector<64x16xf32>
    %63 = math.exp %62 : vector<64x16xf32>
    %cst_21 = arith.constant dense<0.000000e+00> : vector<64xf32>
    %64 = vector.multi_reduction <add>, %63, %cst_21 [1] : vector<64x16xf32> to vector<64xf32>
    %65 = vector.shape_cast %64 : vector<64xf32> to vector<64x1xf32>
    %66 = tpu.reciprocal %65 : vector<64x1xf32> -> vector<64x1xf32>
    %67 = vector.broadcast %66 : vector<64x1xf32> to vector<64x16xf32>
    %68 = arith.mulf %63, %67 : vector<64x16xf32>
    %cst_22 = arith.constant dense<0.000000e+00> : vector<64x128xf32>
    %69 = tpu.matmul %68, %34, %cst_22 {dimension_numbers = #tpu.dot_dimension_numbers<[1], [0], [0], [1], [0, 0, 1, 1], [], []>} : vector<64x16xf32>, vector<16x128xf32>, vector<64x128xf32> -> vector<64x128xf32>
    %cst_23 = arith.constant 1.000000e+00 : f32
    %cst_24 = arith.constant 0.000000e+00 : f32
    %70 = vector.broadcast %cst_23 : f32 to vector<64x128xf32>
    %71 = vector.broadcast %cst_24 : f32 to vector<64x128xf32>
    %72 = arith.select %41, %70, %71 : vector<64x128xi1>, vector<64x128xf32>
    %73 = arith.mulf %69, %72 : vector<64x128xf32>
    %cst_25 = arith.constant 0.000000e+00 : f32
    %74 = vector.broadcast %cst_25 : f32 to vector<16x128xf32>
    %cst_26 = arith.constant 0.000000e+00 : f32
    %75 = vector.broadcast %cst_26 : f32 to vector<16x16xf32>
    %76 = vector.extract_strided_slice %73 {offsets = [0, 0], sizes = [16, 128], strides = [1, 1]} : vector<64x128xf32> to vector<16x128xf32>
    %77 = arith.addf %74, %76 : vector<16x128xf32>
    %78 = vector.extract_strided_slice %68 {offsets = [0, 0], sizes = [16, 16], strides = [1, 1]} : vector<64x16xf32> to vector<16x16xf32>
    %79 = arith.addf %75, %78 : vector<16x16xf32>
    %80 = vector.extract_strided_slice %73 {offsets = [16, 0], sizes = [16, 128], strides = [1, 1]} : vector<64x128xf32> to vector<16x128xf32>
    %81 = arith.addf %77, %80 : vector<16x128xf32>
    %82 = vector.extract_strided_slice %68 {offsets = [16, 0], sizes = [16, 16], strides = [1, 1]} : vector<64x16xf32> to vector<16x16xf32>
    %83 = arith.addf %79, %82 : vector<16x16xf32>
    %84 = vector.extract_strided_slice %73 {offsets = [32, 0], sizes = [16, 128], strides = [1, 1]} : vector<64x128xf32> to vector<16x128xf32>
    %85 = arith.addf %81, %84 : vector<16x128xf32>
    %86 = vector.extract_strided_slice %68 {offsets = [32, 0], sizes = [16, 16], strides = [1, 1]} : vector<64x16xf32> to vector<16x16xf32>
    %87 = arith.addf %83, %86 : vector<16x16xf32>
    %88 = vector.extract_strided_slice %73 {offsets = [48, 0], sizes = [16, 128], strides = [1, 1]} : vector<64x128xf32> to vector<16x128xf32>
    %89 = arith.addf %85, %88 : vector<16x128xf32>
    %90 = vector.extract_strided_slice %68 {offsets = [48, 0], sizes = [16, 16], strides = [1, 1]} : vector<64x16xf32> to vector<16x16xf32>
    %91 = arith.addf %87, %90 : vector<16x16xf32>
    %cst_27 = arith.constant 2.500000e-01 : f32
    %92 = vector.broadcast %cst_27 : f32 to vector<16x16xf32>
    %93 = arith.mulf %91, %92 : vector<16x16xf32>
    %cst_28 = arith.constant 0.000000e+00 : f32
    %94 = vector.broadcast %cst_28 : f32 to vector<16x8xf32>
    %95 = vector.extract_strided_slice %93 {offsets = [0, 0], sizes = [16, 8], strides = [1, 1]} : vector<16x16xf32> to vector<16x8xf32>
    %96 = arith.addf %94, %95 : vector<16x8xf32>
    %97 = vector.extract_strided_slice %93 {offsets = [0, 8], sizes = [16, 8], strides = [1, 1]} : vector<16x16xf32> to vector<16x8xf32>
    %98 = arith.addf %96, %97 : vector<16x8xf32>
    %c0_29 = arith.constant 0 : index
    %c0_30 = arith.constant 0 : index
    %c0_31 = arith.constant 0 : index
    %99 = vector.load %arg5[%c0_29, %c0_30, %c0_31] : memref<3x128x32xf32, #tpu.memory_space<vmem>>, vector<1x128x32xf32>
    %100 = vector.shape_cast %99 : vector<1x128x32xf32> to vector<128x32xf32>
    %cst_32 = arith.constant dense<0.000000e+00> : vector<16x32xf32>
    %101 = tpu.matmul %89, %100, %cst_32 {dimension_numbers = #tpu.dot_dimension_numbers<[1], [0], [0], [1], [0, 0, 1, 1], [], []>} : vector<16x128xf32>, vector<128x32xf32>, vector<16x32xf32> -> vector<16x32xf32>
    %102 = arith.addf %1, %101 : vector<16x32xf32>
    %103 = vector.extract_strided_slice %0 {offsets = [6, 0], sizes = [1, 32], strides = [1, 1]} : vector<10x32xf32> to vector<1x32xf32>
    %104 = vector.broadcast %103 : vector<1x32xf32> to vector<16x32xf32>
    %105 = arith.addf %102, %104 : vector<16x32xf32>
    %106 = vector.extract_strided_slice %0 {offsets = [2, 0], sizes = [1, 32], strides = [1, 1]} : vector<10x32xf32> to vector<1x32xf32>
    %107 = vector.extract_strided_slice %0 {offsets = [3, 0], sizes = [1, 32], strides = [1, 1]} : vector<10x32xf32> to vector<1x32xf32>
    %cst_33 = arith.constant dense<0.000000e+00> : vector<16xf32>
    %108 = vector.multi_reduction <add>, %105, %cst_33 [1] : vector<16x32xf32> to vector<16xf32>
    %109 = vector.shape_cast %108 : vector<16xf32> to vector<16x1xf32>
    %cst_34 = arith.constant 3.200000e+01 : f32
    %110 = vector.broadcast %cst_34 : f32 to vector<16x1xf32>
    %111 = arith.divf %109, %110 : vector<16x1xf32>
    %112 = arith.mulf %105, %105 : vector<16x32xf32>
    %cst_35 = arith.constant dense<0.000000e+00> : vector<16xf32>
    %113 = vector.multi_reduction <add>, %112, %cst_35 [1] : vector<16x32xf32> to vector<16xf32>
    %114 = vector.shape_cast %113 : vector<16xf32> to vector<16x1xf32>
    %cst_36 = arith.constant 3.200000e+01 : f32
    %115 = vector.broadcast %cst_36 : f32 to vector<16x1xf32>
    %116 = arith.divf %114, %115 : vector<16x1xf32>
    %117 = arith.mulf %111, %111 : vector<16x1xf32>
    %118 = arith.subf %116, %117 : vector<16x1xf32>
    %119 = vector.broadcast %111 : vector<16x1xf32> to vector<16x32xf32>
    %120 = arith.subf %105, %119 : vector<16x32xf32>
    %cst_37 = arith.constant 9.99999974E-6 : f32
    %121 = vector.broadcast %cst_37 : f32 to vector<16x1xf32>
    %122 = arith.addf %118, %121 : vector<16x1xf32>
    %123 = math.rsqrt %122 : vector<16x1xf32>
    %124 = vector.broadcast %123 : vector<16x1xf32> to vector<16x32xf32>
    %125 = arith.mulf %120, %124 : vector<16x32xf32>
    %126 = vector.broadcast %106 : vector<1x32xf32> to vector<16x32xf32>
    %127 = arith.mulf %125, %126 : vector<16x32xf32>
    %128 = vector.broadcast %107 : vector<1x32xf32> to vector<16x32xf32>
    %129 = arith.addf %127, %128 : vector<16x32xf32>
    %c0_38 = arith.constant 0 : index
    %c384 = arith.constant 384 : index
    %130 = vector.load %arg3[%c0_38, %c384] : memref<32x896xf32, #tpu.memory_space<vmem>>, vector<32x128xf32>
    %cst_39 = arith.constant dense<0.000000e+00> : vector<16x128xf32>
    %131 = tpu.matmul %129, %130, %cst_39 {dimension_numbers = #tpu.dot_dimension_numbers<[1], [0], [0], [1], [0, 0, 1, 1], [], []>} : vector<16x32xf32>, vector<32x128xf32>, vector<16x128xf32> -> vector<16x128xf32>
    %c0_40 = arith.constant 0 : index
    %c384_41 = arith.constant 384 : index
    %132 = vector.load %arg4[%c0_40, %c384_41] : memref<1x896xf32, #tpu.memory_space<vmem>>, vector<1x128xf32>
    %133 = vector.broadcast %132 : vector<1x128xf32> to vector<16x128xf32>
    %134 = arith.addf %131, %133 : vector<16x128xf32>
    %c0_42 = arith.constant 0 : index
    %c512 = arith.constant 512 : index
    %135 = vector.load %arg3[%c0_42, %c512] : memref<32x896xf32, #tpu.memory_space<vmem>>, vector<32x256xf32>
    %cst_43 = arith.constant dense<0.000000e+00> : vector<32x256xf32>
    %136 = tpu.matmul %2, %135, %cst_43 {dimension_numbers = #tpu.dot_dimension_numbers<[1], [0], [0], [1], [0, 0, 1, 1], [], []>} : vector<32x32xf32>, vector<32x256xf32>, vector<32x256xf32> -> vector<32x256xf32>
    %c0_44 = arith.constant 0 : index
    %c512_45 = arith.constant 512 : index
    %137 = vector.load %arg4[%c0_44, %c512_45] : memref<1x896xf32, #tpu.memory_space<vmem>>, vector<1x256xf32>
    %138 = vector.broadcast %137 : vector<1x256xf32> to vector<32x256xf32>
    %139 = arith.addf %136, %138 : vector<32x256xf32>
    %140 = vector.extract_strided_slice %139 {offsets = [0, 0], sizes = [32, 128], strides = [1, 1]} : vector<32x256xf32> to vector<32x128xf32>
    %141 = vector.extract_strided_slice %139 {offsets = [0, 128], sizes = [32, 128], strides = [1, 1]} : vector<32x256xf32> to vector<32x128xf32>
    %142 = tpu.iota {dimensions = array<i32: 0>} : vector<64x128xi32>
    %143 = tpu.iota {dimensions = array<i32: 1>} : vector<64x128xi32>
    %c4_i32_46 = arith.constant 4 : i32
    %144 = vector.broadcast %c4_i32_46 : i32 to vector<64x128xi32>
    %145 = arith.shrsi %142, %144 : vector<64x128xi32>
    %c3_i32_47 = arith.constant 3 : i32
    %146 = vector.broadcast %c3_i32_47 : i32 to vector<64x128xi32>
    %147 = arith.shrsi %143, %146 : vector<64x128xi32>
    %148 = arith.cmpi eq, %147, %145 : vector<64x128xi32>
    %149 = tpu.concatenate %134, %134, %134, %134 in 0 : vector<16x128xf32>, vector<16x128xf32>, vector<16x128xf32>, vector<16x128xf32> -> vector<64x128xf32>
    %cst_48 = arith.constant 0.353553385 : f32
    %cst_49 = arith.constant 0.000000e+00 : f32
    %150 = vector.broadcast %cst_48 : f32 to vector<64x128xf32>
    %151 = vector.broadcast %cst_49 : f32 to vector<64x128xf32>
    %152 = arith.select %148, %150, %151 : vector<64x128xi1>, vector<64x128xf32>
    %153 = arith.mulf %149, %152 : vector<64x128xf32>
    %cst_50 = arith.constant dense<0.000000e+00> : vector<64x32xf32>
    %154 = tpu.matmul %153, %140, %cst_50 {dimension_numbers = #tpu.dot_dimension_numbers<[1], [1], [0], [0], [0, 0, 1, 0], [], []>} : vector<64x128xf32>, vector<32x128xf32>, vector<64x32xf32> -> vector<64x32xf32>
    %155 = tpu.iota {dimensions = array<i32: 0>} : vector<64x32xi32>
    %156 = tpu.iota {dimensions = array<i32: 1>} : vector<64x32xi32>
    %c3_i32_51 = arith.constant 3 : i32
    %157 = vector.broadcast %c3_i32_51 : i32 to vector<64x32xi32>
    %158 = arith.shrsi %155, %157 : vector<64x32xi32>
    %c1_i32_52 = arith.constant 1 : i32
    %159 = vector.broadcast %c1_i32_52 : i32 to vector<64x32xi32>
    %160 = arith.andi %158, %159 : vector<64x32xi32>
    %c4_i32_53 = arith.constant 4 : i32
    %161 = vector.broadcast %c4_i32_53 : i32 to vector<64x32xi32>
    %162 = arith.shrsi %156, %161 : vector<64x32xi32>
    %163 = arith.cmpi eq, %160, %162 : vector<64x32xi32>
    %cst_54 = arith.constant -1.000000e+30 : f32
    %164 = vector.broadcast %cst_54 : f32 to vector<64x32xf32>
    %165 = arith.select %163, %154, %164 : vector<64x32xi1>, vector<64x32xf32>
    %cst_55 = arith.constant dense<0xFF800000> : vector<64xf32>
    %166 = vector.multi_reduction <maximumf>, %165, %cst_55 [1] : vector<64x32xf32> to vector<64xf32>
    %167 = vector.shape_cast %166 : vector<64xf32> to vector<64x1xf32>
    %168 = vector.broadcast %167 : vector<64x1xf32> to vector<64x32xf32>
    %169 = arith.subf %165, %168 : vector<64x32xf32>
    %170 = math.exp %169 : vector<64x32xf32>
    %cst_56 = arith.constant dense<0.000000e+00> : vector<64xf32>
    %171 = vector.multi_reduction <add>, %170, %cst_56 [1] : vector<64x32xf32> to vector<64xf32>
    %172 = vector.shape_cast %171 : vector<64xf32> to vector<64x1xf32>
    %173 = tpu.reciprocal %172 : vector<64x1xf32> -> vector<64x1xf32>
    %174 = vector.broadcast %173 : vector<64x1xf32> to vector<64x32xf32>
    %175 = arith.mulf %170, %174 : vector<64x32xf32>
    %cst_57 = arith.constant dense<0.000000e+00> : vector<64x128xf32>
    %176 = tpu.matmul %175, %141, %cst_57 {dimension_numbers = #tpu.dot_dimension_numbers<[1], [0], [0], [1], [0, 0, 1, 1], [], []>} : vector<64x32xf32>, vector<32x128xf32>, vector<64x128xf32> -> vector<64x128xf32>
    %cst_58 = arith.constant 1.000000e+00 : f32
    %cst_59 = arith.constant 0.000000e+00 : f32
    %177 = vector.broadcast %cst_58 : f32 to vector<64x128xf32>
    %178 = vector.broadcast %cst_59 : f32 to vector<64x128xf32>
    %179 = arith.select %148, %177, %178 : vector<64x128xi1>, vector<64x128xf32>
    %180 = arith.mulf %176, %179 : vector<64x128xf32>
    %cst_60 = arith.constant 0.000000e+00 : f32
    %181 = vector.broadcast %cst_60 : f32 to vector<16x128xf32>
    %cst_61 = arith.constant 0.000000e+00 : f32
    %182 = vector.broadcast %cst_61 : f32 to vector<16x32xf32>
    %183 = vector.extract_strided_slice %180 {offsets = [0, 0], sizes = [16, 128], strides = [1, 1]} : vector<64x128xf32> to vector<16x128xf32>
    %184 = arith.addf %181, %183 : vector<16x128xf32>
    %185 = vector.extract_strided_slice %175 {offsets = [0, 0], sizes = [16, 32], strides = [1, 1]} : vector<64x32xf32> to vector<16x32xf32>
    %186 = arith.addf %182, %185 : vector<16x32xf32>
    %187 = vector.extract_strided_slice %180 {offsets = [16, 0], sizes = [16, 128], strides = [1, 1]} : vector<64x128xf32> to vector<16x128xf32>
    %188 = arith.addf %184, %187 : vector<16x128xf32>
    %189 = vector.extract_strided_slice %175 {offsets = [16, 0], sizes = [16, 32], strides = [1, 1]} : vector<64x32xf32> to vector<16x32xf32>
    %190 = arith.addf %186, %189 : vector<16x32xf32>
    %191 = vector.extract_strided_slice %180 {offsets = [32, 0], sizes = [16, 128], strides = [1, 1]} : vector<64x128xf32> to vector<16x128xf32>
    %192 = arith.addf %188, %191 : vector<16x128xf32>
    %193 = vector.extract_strided_slice %175 {offsets = [32, 0], sizes = [16, 32], strides = [1, 1]} : vector<64x32xf32> to vector<16x32xf32>
    %194 = arith.addf %190, %193 : vector<16x32xf32>
    %195 = vector.extract_strided_slice %180 {offsets = [48, 0], sizes = [16, 128], strides = [1, 1]} : vector<64x128xf32> to vector<16x128xf32>
    %196 = arith.addf %192, %195 : vector<16x128xf32>
    %197 = vector.extract_strided_slice %175 {offsets = [48, 0], sizes = [16, 32], strides = [1, 1]} : vector<64x32xf32> to vector<16x32xf32>
    %198 = arith.addf %194, %197 : vector<16x32xf32>
    %cst_62 = arith.constant 2.500000e-01 : f32
    %199 = vector.broadcast %cst_62 : f32 to vector<16x32xf32>
    %200 = arith.mulf %198, %199 : vector<16x32xf32>
    %cst_63 = arith.constant 0.000000e+00 : f32
    %201 = vector.broadcast %cst_63 : f32 to vector<16x16xf32>
    %202 = vector.extract_strided_slice %200 {offsets = [0, 0], sizes = [16, 16], strides = [1, 1]} : vector<16x32xf32> to vector<16x16xf32>
    %203 = arith.addf %201, %202 : vector<16x16xf32>
    %204 = vector.extract_strided_slice %200 {offsets = [0, 16], sizes = [16, 16], strides = [1, 1]} : vector<16x32xf32> to vector<16x16xf32>
    %205 = arith.addf %203, %204 : vector<16x16xf32>
    %c1 = arith.constant 1 : index
    %c0_64 = arith.constant 0 : index
    %c0_65 = arith.constant 0 : index
    %206 = vector.load %arg5[%c1, %c0_64, %c0_65] : memref<3x128x32xf32, #tpu.memory_space<vmem>>, vector<1x128x32xf32>
    %207 = vector.shape_cast %206 : vector<1x128x32xf32> to vector<128x32xf32>
    %cst_66 = arith.constant dense<0.000000e+00> : vector<16x32xf32>
    %208 = tpu.matmul %196, %207, %cst_66 {dimension_numbers = #tpu.dot_dimension_numbers<[1], [0], [0], [1], [0, 0, 1, 1], [], []>} : vector<16x128xf32>, vector<128x32xf32>, vector<16x32xf32> -> vector<16x32xf32>
    %209 = arith.addf %105, %208 : vector<16x32xf32>
    %210 = vector.extract_strided_slice %0 {offsets = [7, 0], sizes = [1, 32], strides = [1, 1]} : vector<10x32xf32> to vector<1x32xf32>
    %211 = vector.broadcast %210 : vector<1x32xf32> to vector<16x32xf32>
    %212 = arith.addf %209, %211 : vector<16x32xf32>
    %213 = vector.extract_strided_slice %0 {offsets = [4, 0], sizes = [1, 32], strides = [1, 1]} : vector<10x32xf32> to vector<1x32xf32>
    %214 = vector.extract_strided_slice %0 {offsets = [5, 0], sizes = [1, 32], strides = [1, 1]} : vector<10x32xf32> to vector<1x32xf32>
    %cst_67 = arith.constant dense<0.000000e+00> : vector<16xf32>
    %215 = vector.multi_reduction <add>, %212, %cst_67 [1] : vector<16x32xf32> to vector<16xf32>
    %216 = vector.shape_cast %215 : vector<16xf32> to vector<16x1xf32>
    %cst_68 = arith.constant 3.200000e+01 : f32
    %217 = vector.broadcast %cst_68 : f32 to vector<16x1xf32>
    %218 = arith.divf %216, %217 : vector<16x1xf32>
    %219 = arith.mulf %212, %212 : vector<16x32xf32>
    %cst_69 = arith.constant dense<0.000000e+00> : vector<16xf32>
    %220 = vector.multi_reduction <add>, %219, %cst_69 [1] : vector<16x32xf32> to vector<16xf32>
    %221 = vector.shape_cast %220 : vector<16xf32> to vector<16x1xf32>
    %cst_70 = arith.constant 3.200000e+01 : f32
    %222 = vector.broadcast %cst_70 : f32 to vector<16x1xf32>
    %223 = arith.divf %221, %222 : vector<16x1xf32>
    %224 = arith.mulf %218, %218 : vector<16x1xf32>
    %225 = arith.subf %223, %224 : vector<16x1xf32>
    %226 = vector.broadcast %218 : vector<16x1xf32> to vector<16x32xf32>
    %227 = arith.subf %212, %226 : vector<16x32xf32>
    %cst_71 = arith.constant 9.99999974E-6 : f32
    %228 = vector.broadcast %cst_71 : f32 to vector<16x1xf32>
    %229 = arith.addf %225, %228 : vector<16x1xf32>
    %230 = math.rsqrt %229 : vector<16x1xf32>
    %231 = vector.broadcast %230 : vector<16x1xf32> to vector<16x32xf32>
    %232 = arith.mulf %227, %231 : vector<16x32xf32>
    %233 = vector.broadcast %213 : vector<1x32xf32> to vector<16x32xf32>
    %234 = arith.mulf %232, %233 : vector<16x32xf32>
    %235 = vector.broadcast %214 : vector<1x32xf32> to vector<16x32xf32>
    %236 = arith.addf %234, %235 : vector<16x32xf32>
    %c0_72 = arith.constant 0 : index
    %c768 = arith.constant 768 : index
    %237 = vector.load %arg3[%c0_72, %c768] : memref<32x896xf32, #tpu.memory_space<vmem>>, vector<32x128xf32>
    %cst_73 = arith.constant dense<0.000000e+00> : vector<16x128xf32>
    %238 = tpu.matmul %236, %237, %cst_73 {dimension_numbers = #tpu.dot_dimension_numbers<[1], [0], [0], [1], [0, 0, 1, 1], [], []>} : vector<16x32xf32>, vector<32x128xf32>, vector<16x128xf32> -> vector<16x128xf32>
    %c0_74 = arith.constant 0 : index
    %c768_75 = arith.constant 768 : index
    %239 = vector.load %arg4[%c0_74, %c768_75] : memref<1x896xf32, #tpu.memory_space<vmem>>, vector<1x128xf32>
    %240 = vector.broadcast %239 : vector<1x128xf32> to vector<16x128xf32>
    %241 = arith.addf %238, %240 : vector<16x128xf32>
    %242 = arith.mulf %241, %241 : vector<16x128xf32>
    %243 = arith.mulf %241, %242 : vector<16x128xf32>
    %cst_76 = arith.constant 4.471500e-02 : f32
    %244 = vector.broadcast %cst_76 : f32 to vector<16x128xf32>
    %245 = arith.mulf %244, %243 : vector<16x128xf32>
    %246 = arith.addf %241, %245 : vector<16x128xf32>
    %cst_77 = arith.constant 0.797884583 : f32
    %247 = vector.broadcast %cst_77 : f32 to vector<16x128xf32>
    %248 = arith.mulf %247, %246 : vector<16x128xf32>
    %249 = math.tanh %248 : vector<16x128xf32>
    %cst_78 = arith.constant 1.000000e+00 : f32
    %250 = vector.broadcast %cst_78 : f32 to vector<16x128xf32>
    %251 = arith.addf %250, %249 : vector<16x128xf32>
    %cst_79 = arith.constant 5.000000e-01 : f32
    %252 = vector.broadcast %cst_79 : f32 to vector<16x128xf32>
    %253 = arith.mulf %252, %251 : vector<16x128xf32>
    %254 = arith.mulf %241, %253 : vector<16x128xf32>
    %c2 = arith.constant 2 : index
    %c0_80 = arith.constant 0 : index
    %c0_81 = arith.constant 0 : index
    %255 = vector.load %arg5[%c2, %c0_80, %c0_81] : memref<3x128x32xf32, #tpu.memory_space<vmem>>, vector<1x128x32xf32>
    %256 = vector.shape_cast %255 : vector<1x128x32xf32> to vector<128x32xf32>
    %cst_82 = arith.constant dense<0.000000e+00> : vector<16x32xf32>
    %257 = tpu.matmul %254, %256, %cst_82 {dimension_numbers = #tpu.dot_dimension_numbers<[1], [0], [0], [1], [0, 0, 1, 1], [], []>} : vector<16x128xf32>, vector<128x32xf32>, vector<16x32xf32> -> vector<16x32xf32>
    %258 = arith.addf %212, %257 : vector<16x32xf32>
    %259 = vector.extract_strided_slice %0 {offsets = [8, 0], sizes = [1, 32], strides = [1, 1]} : vector<10x32xf32> to vector<1x32xf32>
    %260 = vector.broadcast %259 : vector<1x32xf32> to vector<16x32xf32>
    %261 = arith.addf %258, %260 : vector<16x32xf32>
    %cst_83 = arith.constant 0.000000e+00 : f32
    %262 = vector.broadcast %cst_83 : f32 to vector<16x72xf32>
    %263 = tpu.concatenate %261, %98, %205, %262 in 1 : vector<16x32xf32>, vector<16x8xf32>, vector<16x16xf32>, vector<16x72xf32> -> vector<16x128xf32>
    %c0_84 = arith.constant 0 : index
    %c0_85 = arith.constant 0 : index
    %264 = vector.load %arg7[%c0_84, %c0_85] : memref<16x128xf32, #tpu.memory_space<vmem>>, vector<16x128xf32>
    tpu.vector_store %arg7[%c0_84, %c0_85], %263 {strides = array<i32>} : memref<16x128xf32, #tpu.memory_space<vmem>>, vector<16x128xf32>,
    return
  }
  func.func @transform_0(%arg0: i32) -> (i32, i32) {
    %c0_i32 = arith.constant 0 : i32
    %c0_i32_0 = arith.constant 0 : i32
    %c0_i32_1 = arith.constant 0 : i32
    return %c0_i32, %c0_i32_0 : i32, i32
  }
  func.func @transform_1(%arg0: i32) -> (i32, i32) {
    %c0_i32 = arith.constant 0 : i32
    %c0_i32_0 = arith.constant 0 : i32
    %c0_i32_1 = arith.constant 0 : i32
    return %c0_i32, %c0_i32_0 : i32, i32
  }
  func.func @transform_2(%arg0: i32) -> (i32, i32) {
    %c0_i32 = arith.constant 0 : i32
    %c0_i32_0 = arith.constant 0 : i32
    %c0_i32_1 = arith.constant 0 : i32
    return %c0_i32, %c0_i32_0 : i32, i32
  }
  func.func @transform_3(%arg0: i32) -> (i32, i32) {
    %c0_i32 = arith.constant 0 : i32
    %c0_i32_0 = arith.constant 0 : i32
    %c0_i32_1 = arith.constant 0 : i32
    return %c0_i32, %c0_i32_0 : i32, i32
  }
  func.func @transform_4(%arg0: i32) -> (i32, i32, i32) {
    %c0_i32 = arith.constant 0 : i32
    %c0_i32_0 = arith.constant 0 : i32
    %c0_i32_1 = arith.constant 0 : i32
    %c0_i32_2 = arith.constant 0 : i32
    return %c0_i32, %c0_i32_0, %c0_i32_1 : i32, i32, i32
  }
  func.func @transform_5(%arg0: i32) -> (i32, i32) {
    %c0_i32 = arith.constant 0 : i32
    %c0_i32_0 = arith.constant 0 : i32
    %c0_i32_1 = arith.constant 0 : i32
    return %c0_i32, %c0_i32_0 : i32, i32
  }
  func.func @transform_6(%arg0: i32) -> (i32, i32) {
    %c0_i32 = arith.constant 0 : i32
    %c0_i32_0 = arith.constant 0 : i32
    %c0_i32_1 = arith.constant 0 : i32
    return %c0_i32, %c0_i32_0 : i32, i32
  }
}

</mosaic_0001>

<bundles_post_ra>
// kernel: tpu_custom_call.1
= control target key start
LH: loop header
LB: loop body
LE: loop exit
PB: predicated region body
PF: predicated region fallthrough
CT: control target
= control target key end

     0   :  { %vm32_vm0 = vcmask 261120   ;;  %s3230_s0 = inlined_call_operand.vmem [shape: f32[16,32], index: 0, kind: input, shape index: {}]   ;;  %s3231_s1 = inlined_call_operand.vmem [shape: f32[32,32], index: 1, kind: input, shape index: {}]   ;;  %s3232_s2 = inlined_call_operand.vmem [shape: f32[32,896], index: 2, kind: input, shape index: {}]   ;;  %s3233_s3 = inlined_call_operand.vmem [shape: f32[1,896], index: 3, kind: input, shape index: {}]   ;;  %s3234_s4 = inlined_call_operand.vmem [shape: f32[3,128,32], index: 4, kind: input, shape index: {}]   ;;  %s3235_s5 = inlined_call_operand.vmem [shape: f32[10,32], index: 5, kind: input, shape index: {}]   ;;  %s3236_s6 = inlined_call_operand.hbm [shape: f32[16,128], index: 6, kind: output, shape index: {}]  }
   0x1   :  { %v2548_v0 = vld [vmem:[%s3230_s0 + $0x8] sm:$0xff]  ;;  %v2553_v1 = vld [vmem:[%s3230_s0] sm:$0xff] }
   0x2   :  { %11 = vsyncpa [#allocation3], 0  ;;  %v36_v2 = vsel %vm32_vm0, %v2548_v0, 0.0  ;;  %v33_v3 = vsel %vm32_vm0, %v2553_v1, 0.0  ;;  %v43_v4 = vmul.f32 %v2548_v0, %v2548_v0  ;;  %v42_v5 = vmul.f32 %v2553_v1, %v2553_v1  ;;  %v77_v8 = vld [vmem:[%s3232_s2 + $0x8] sm:$0xff]  ;;  %v80_v9 = vld [vmem:[%s3232_s2 + $0x40] sm:$0xff] }
   0x3   :  { %37 = vadd.xlane.f32.xlu1 %v36_v2  ;;  %34 = vadd.xlane.f32.xlu0 %v33_v3  ;;  %v76_v10 = vld [vmem:[%s3232_s2] sm:$0xff]  ;;  %v2229_v11 = vpack.c.bf16 %v80_v9, %v77_v8  ;;  %v79_v12 = vld [vmem:[%s3232_s2 + $0x38] sm:$0xff]  ;;  %v78_v13 = vld [vmem:[%s3232_s2 + $0x10] sm:$0xff]  ;;  %v2502_v15 = vmov 0.0   ;;  %v64_v39 = vlaneseq  ;;  %vm444_vm11 = vcmask 130048   ;;  %s2503_s27 = smov 120  }
   0x4   :  { %v47_v6 = vsel %vm32_vm0, %v43_v4, 0.0  ;;  %v44_v7 = vsel %vm32_vm0, %v42_v5, 0.0  ;;  %v81_v14 = vld [vmem:[%s3232_s2 + $0x48] sm:$0xff]  ;;  %175 = vmatprep.mubr.f32.mxu0 %v2502_v15  ;;  %v2231_v16 = vpack.c.bf16 %v79_v12, %v76_v10  ;;  %v83_v18 = vld [vmem:[%s3232_s2 + $0x78] sm:$0xff]  ;;  %v86_v19 = vld [vmem:[%s3232_s2 + $0xb0] sm:$0xff]  ;;  %s2504_s28 = smov 112  }
   0x5   :  { %v2237_v17 = vpack.c.bf16 %v81_v14, %v78_v13  ;;  %v82_v20 = vld [vmem:[%s3232_s2 + $0x70] sm:$0xff]  ;;  %2230 = vmatprep.subr.bf16.mxu0 %v2229_v11  ;;  %v2233_v21 = vpack.c.bf16 %v86_v19, %v83_v18  ;;  %v85_v22 = vld [vmem:[%s3232_s2 + $0xa8] sm:$0xff]  ;;  %v84_v23 = vld [vmem:[%s3232_s2 + $0x80] sm:$0xff]  ;;  %v2602_v42 = vshrl.u32 %v64_v39, 7  ;;  %v2626_v58 = vand.u32 127, %v64_v39  ;;  %s2506_s13 = smov 40  }
   0x6   :  { %v87_v24 = vld [vmem:[%s3232_s2 + $0xb8] sm:$0xff]  ;;  %2232 = vmatpush1.bf16.msra.mxu0 %v2231_v16  ;;  %v2235_v25 = vpack.c.bf16 %v85_v22, %v82_v20  ;;  %v2610_v44 = vld [vmem:[%s3235_s5] sm:$0xff] }
   0x7   :  { %48 = vadd.xlane.f32.xlu1 %v47_v6  ;;  %45 = vadd.xlane.f32.xlu0 %v44_v7  ;;  %v2241_v26 = vpack.c.bf16 %v87_v24, %v84_v23  ;;  %v2605_v43 = vsub.s32 0, %v2602_v42  ;;  %v2613_v45 = vsub.s32 1, %v2602_v42  ;;  %v2629_v59 = vshra.s32 %v2626_v58, 3  ;;  %v88_v61 = vld [vmem:[%s3233_s3] sm:$0x7] }
   0x8   :  { %2238 = vmatprep.subr.bf16.mxu1 %v2237_v17  ;;  %2234 = vmatprep.subr.bf16.mxu0 %v2233_v21  ;;  %v274_v60 = vshra.s32 %v2602_v42, 4  ;;  %v100_v62 = vsub.s32 2, %v2602_v42  ;;  %v265_v12 = vadd.s32 8, %v2602_v42  ;;  %v2653_v16 = vadd.s32 16, %v2602_v42 }
   0x9   :  { %2240 = vmatpush3.bf16.msra.mxu1 %v2237_v17  ;;  %v67_v47 = vrot.slane %v2610_v44, %v2605_v43  ;;  %v73_v51 = vrot.slane %v2610_v44, %v2613_v45  ;;  %v93_v63 = vrot.slane %v88_v61, %v2605_v43  ;;  %v97_v9 = vrot.slane %v88_v61, %v2613_v45 }
   0xa   :  { %2242 = vmatprep.subr.bf16.mxu1 %v2241_v26  ;;  %2236 = vmatpush1.bf16.msra.mxu0 %v2235_v25  ;;  %vm2638_vm1 = vcmp.eq.s32.totalorder %v2629_v59, %v274_v60  ;;  %v101_v3 = vrot.slane %v88_v61, %v100_v62  ;;  %v275_v21 = vshra.s32 %v265_v12, 4  ;;  %v267_v23 = vadd.s32 24, %v2602_v42 }
   0xb   :  { %v2647_v5 = vsel %vm2638_vm1, 0.35355338, %v2502_v15  ;;  %v276_v24 = vshra.s32 %v2653_v16, 4  ;;  %v2658_v25 = vadd.s32 32, %v2602_v42 }
   0xc   :  { %vm2661_vm2 = vcmp.eq.s32.totalorder %v2629_v59, %v275_v21 }
   0xd   :  { %2244 = vmatpush3.bf16.msra.mxu1 %v2241_v26  ;;  %vm2667_vm3 = vcmp.eq.s32.totalorder %v2629_v59, %v276_v24 }
  0x90   :  { %v38_v27 = vpop.xlane.xlu1 %37  ;;  %v35_v28 = vpop.xlane.xlu0 %34 }
  0x91   :  { %v41_v29 = vmul.f32 0.03125, %v38_v27  ;;  %v40_v30 = vmul.f32 0.03125, %v35_v28  ;;  %v277_v28 = vshra.s32 %v267_v23, 4 }
  0x93   :  { %v53_v31 = vmul.f32 %v41_v29, %v41_v29  ;;  %v52_v34 = vmul.f32 %v40_v30, %v40_v30  ;;  %v57_v46 = vsub.f32 %v2548_v0, %v41_v29  ;;  %v56_v49 = vsub.f32 %v2553_v1, %v40_v30 }
  0x94   :  { %v49_v32 = vpop.xlane.xlu1 %48  ;;  %v46_v33 = vpop.xlane.xlu0 %45  ;;  %v269_v29 = vadd.s32 40, %v2602_v42  ;;  %vm2686_vm4 = vcmp.eq.s32.totalorder %v2629_v59, %v277_v28 }
  0x95   :  { %v51_v35 = vmul.f32 0.03125, %v49_v32  ;;  %v50_v36 = vmul.f32 0.03125, %v46_v33  ;;  %v2673_v32 = vadd.s32 48, %v2602_v42 }
  0x97   :  { %v55_v37 = vsub.f32 %v51_v35, %v53_v31  ;;  %v54_v38 = vsub.f32 %v50_v36, %v52_v34  ;;  %v278_v31 = vshra.s32 %v2658_v25, 4  ;;  %v2678_v34 = vsel %vm2661_vm2, 0.35355338, %v2502_v15 }
  0x98   :  { %v2683_v35 = vsel %vm2667_vm3, 0.35355338, %v2502_v15  ;;  %v418_v24 = vshra.s32 %v2673_v32, 3 }
  0x99   :  { %v59_v40 = vadd.f32 1e-05, %v55_v37  ;;  %v58_v41 = vadd.f32 1e-05, %v54_v38  ;;  %v279_v37 = vshra.s32 %v269_v29, 4  ;;  %v271_v38 = vadd.s32 56, %v2602_v42 }
  0x9a   :  { %vm2692_vm5 = vcmp.eq.s32.totalorder %v2629_v59, %v278_v31 }
  0x9b   :  { %2397 = vrsqrt.f32 %v59_v40  ;;  %v280_v40 = vshra.s32 %v2673_v32, 4  ;;  %vm2710_vm6 = vcmp.eq.s32.totalorder %v2629_v59, %v279_v37  ;;  %v419_v21 = vshra.s32 %v271_v38, 3 }
  0x9c   :  { %2399 = vrsqrt.f32 %v58_v41  ;;  %v2891_v2 = vsel %vm2710_vm6, 1.0, %v2502_v15  ;;  %v2896_v30 = vsel %vm2692_vm5, 1.0, %v2502_v15 }
  0x9d   :  { %vm2715_vm7 = vcmp.eq.s32.totalorder %v2629_v59, %v280_v40 }
  0xa5   :  { %v2398_v48 = vpop.eup %2397 }
  0xa6   :  { %v2400_v50 = vpop.eup %2399  ;;  %v63_v52 = vmul.f32 %v2398_v48, %v57_v46  ;;  %v2707_v48 = vsel %vm2692_vm5, 0.35355338, %v2502_v15 }
  0xa7   :  { %v62_v53 = vmul.f32 %v2400_v50, %v56_v49  ;;  %v281_v50 = vshra.s32 %v271_v38, 4  ;;  %v2778_v38 = vand.u32 1, %v418_v24 }
  0xa8   :  { %v69_v54 = vmul.f32 %v67_v47, %v63_v52 }
  0xa9   :  { %v68_v55 = vmul.f32 %v67_v47, %v62_v53  ;;  %v2702_v47 = vsel %vm2686_vm4, 0.35355338, %v2502_v15  ;;  %vm2732_vm8 = vcmp.eq.s32.totalorder %v2629_v59, %v281_v50 }
  0xaa   :  { %v75_v56 = vadd.f32 %v73_v51, %v69_v54  ;;  %v2724_v54 = vsel %vm2710_vm6, 0.35355338, %v2502_v15  ;;  %v2741_v61 = vsel %vm2732_vm8, 0.35355338, %v2502_v15 }
  0xab   :  { %v74_v57 = vadd.f32 %v73_v51, %v68_v55  ;;  %v2729_v55 = vsel %vm2715_vm7, 0.35355338, %v2502_v15 }
  0xad   :  { %1841 = vmatmul.mubr.msk.f32.vlgmr.msra.gmra.mrb[0].mxu0 %vm32_vm0, %v74_v57  ;;  %2027 = vmatprep.mubr.msk.f32.mxu1 %vm32_vm0, %v74_v57 }
  0xae   :  { %2028 = vmatmul.mubr.msk.f32.vlgmr.msra.gmra.mrb[0].mxu1 %vm32_vm0, %v75_v56  ;;  %181 = vmatprep.mubr.f32.mxu0 %v2502_v15 }
  0xb1   :  { %1842 = vmatmul.mubr.msk.f32.gmra.mrb[2].mxu0 %vm32_vm0, %v75_v56  ;;  %v803_v56 = vsub.s32 6, %v2602_v42 }
 0x180   :  { %v177_v4 = vpop.f32.mrb[0].mxu0 }
 0x181   :  { %v178_v6 = vadd.f32 %v177_v4, %v93_v63  ;;  %v179_v7 = vpop.f32.mrb[1].mxu0  ;;  %v2029_v8 = vpop.f32.mrb[0].mxu1  ;;  %v412_v4 = vshra.s32 %v2602_v42, 3 }
 0x182   :  { %v260_v10 = vadd.f32 %v2029_v8, %v101_v3  ;;  %v254_v11 = vpop.f32.mrb[1].mxu1  ;;  %v180_v20 = vadd.f32 %v179_v7, %v97_v9  ;;  %v415_v7 = vshra.s32 %v267_v23, 3 }
 0x183   :  { %v255_v13 = vadd.f32 %v254_v11, %v101_v3  ;;  %v299_v14 = vmul.f32 %v2647_v5, %v178_v6  ;;  %v301_v46 = vmul.f32 %v2683_v35, %v178_v6  ;;  %v303_v53 = vmul.f32 %v2707_v48, %v178_v6 }
 0x184   :  { %v183_v17 = vpop.f32.mrb[2].mxu0  ;;  %v305_v60 = vmul.f32 %v2729_v55, %v178_v6  ;;  %v413_v3 = vshra.s32 %v265_v12, 3  ;;  %v414_v6 = vshra.s32 %v2653_v16, 3  ;;  %v417_v11 = vshra.s32 %v269_v29, 3 }
 0x185   :  { %v2249_v18 = vpack.c.bf16 %v260_v10, %v255_v13  ;;  %v185_v19 = vpop.f32.mrb[3].mxu0  ;;  %2034 = vmatprep.mubr.f32.mxu0 %v299_v14  ;;  %v184_v33 = vadd.f32 %v183_v17, %v93_v63  ;;  %v2750_v10 = vand.u32 1, %v415_v7  ;;  %v416_v13 = vshra.s32 %v2658_v25, 3 }
 0x186   :  { %v186_v22 = vadd.f32 %v185_v19, %v97_v9  ;;  %v2745_v8 = vand.u32 1, %v413_v3  ;;  %v2747_v9 = vand.u32 1, %v412_v4  ;;  %v2756_v12 = vand.u32 1, %v414_v6 }
 0x187   :  { %2250 = vmatprep.subr.bf16.mxu1 %v2249_v18  ;;  %v300_v41 = vmul.f32 %v2678_v34, %v184_v33  ;;  %v302_v52 = vmul.f32 %v2702_v47, %v184_v33  ;;  %v304_v57 = vmul.f32 %v2724_v54, %v184_v33  ;;  %v306_v63 = vmul.f32 %v2741_v61, %v184_v33 }
 0x188   :  { %v2245_v26 = vpack.c.bf16 %v186_v22, %v180_v20  ;;  %2252 = vmatpush3.bf16.msra.mxu1 %v2249_v18  ;;  %vm429_vm9 = vcmp.eq.s32.totalorder %v2745_v8, %v2629_v59  ;;  %vm428_vm10 = vcmp.eq.s32.totalorder %v2747_v9, %v2629_v59  ;;  %vm431_vm12 = vcmp.eq.s32.totalorder %v2750_v10, %v2629_v59 }
 0x189   :  { %v2762_v20 = vand.u32 1, %v417_v11  ;;  %vm430_vm13 = vcmp.eq.s32.totalorder %v2756_v12, %v2629_v59  ;;  %v2767_v23 = vand.u32 1, %v416_v13  ;;  %v2773_v33 = vand.u32 1, %v419_v21 }
 0x18a   :  { %2246 = vmatprep.subr.bf16.mxu0 %v2245_v26 }
 0x18b   :  { %2248 = vmatpush3.bf16.xpose.msra.mxu0 %v2245_v26  ;;  %vm433_vm14 = vcmp.eq.s32.totalorder %v2762_v20, %v2629_v59  ;;  %vm432_vm15 = vcmp.eq.s32.totalorder %v2767_v23, %v2629_v59 }
 0x192   :  { %2035 = vmatmul.mubr.f32.vlgmr.msra.gmra.mrb[4].mxu0 %v300_v41 }
 0x193   :  { %2037 = vmatprep.mubr.f32.mxu0 %v301_v46 }
 0x196   :  { %2038 = vmatmul.mubr.f32.gmra.mrb[6].mxu0 %v302_v52 }
 0x197   :  { %2040 = vmatprep.mubr.f32.mxu0 %v303_v53 }
 0x19a   :  { %2041 = vmatmul.mubr.f32.gmra.mrb[8].mxu0 %v304_v57 }
 0x19b   :  { %2043 = vmatprep.mubr.f32.mxu0 %v305_v60 }
 0x19e   :  { %2044 = vmatmul.mubr.f32.gmra.mrb[10].mxu0 %v306_v63 }
 0x265   :  { %v2036_v14 = vpop.f32.mrb[4].mxu0 }
 0x266   :  { %v437_v17 = vsel %vm429_vm9, %v2036_v14, -1e+30  ;;  %v373_v18 = vpop.f32.mrb[5].mxu0  ;;  %vm435_vm9 = vcmp.eq.s32.totalorder %v2773_v33, %v2629_v59 }
 0x267   :  { %v436_v16 = vsel %vm428_vm10, %v373_v18, -1e+30  ;;  %v448_v19 = vsel %vm444_vm11, %v437_v17, -inf  ;;  %vm434_vm10 = vcmp.eq.s32.totalorder %v2778_v38, %v2629_v59 }
 0x268   :  { %449 = vmax.xlane.f32.xlu1 %v448_v19  ;;  %v445_v22 = vsel %vm444_vm11, %v436_v16, -inf }
 0x269   :  { %446 = vmax.xlane.f32.xlu0 %v445_v22  ;;  %v2039_v25 = vpop.f32.mrb[6].mxu0 }
 0x26a   :  { %v439_v26 = vsel %vm431_vm12, %v2039_v25, -1e+30  ;;  %v383_v28 = vpop.f32.mrb[7].mxu0  ;;  %vm1820_vm12 = vcmask 457728  }
 0x26b   :  { %v438_v29 = vsel %vm430_vm13, %v383_v28, -1e+30  ;;  %v454_v31 = vsel %vm444_vm11, %v439_v26, -inf }
 0x26c   :  { %455 = vmax.xlane.f32.xlu1 %v454_v31  ;;  %v451_v37 = vsel %vm444_vm11, %v438_v29, -inf }
 0x26d   :  { %452 = vmax.xlane.f32.xlu0 %v451_v37  ;;  %v2042_v32 = vpop.f32.mrb[8].mxu0 }
 0x26e   :  { %v441_v40 = vsel %vm433_vm14, %v2042_v32, -1e+30  ;;  %v393_v41 = vpop.f32.mrb[9].mxu0 }
 0x26f   :  { %v440_v46 = vsel %vm432_vm15, %v393_v41, -1e+30  ;;  %v460_v50 = vsel %vm444_vm11, %v441_v40, -inf }
 0x270   :  { %461 = vmax.xlane.f32.xlu1 %v460_v50  ;;  %v457_v52 = vsel %vm444_vm11, %v440_v46, -inf }
 0x271   :  { %458 = vmax.xlane.f32.xlu0 %v457_v52  ;;  %v2045_v53 = vpop.f32.mrb[10].mxu0 }
 0x272   :  { %v443_v57 = vsel %vm435_vm9, %v2045_v53, -1e+30  ;;  %v403_v60 = vpop.f32.mrb[11].mxu0 }
 0x273   :  { %v442_v63 = vsel %vm434_vm10, %v403_v60, -1e+30  ;;  %v466_v3 = vsel %vm444_vm11, %v443_v57, -inf }
 0x274   :  { %467 = vmax.xlane.f32.xlu1 %v466_v3  ;;  %v463_v4 = vsel %vm444_vm11, %v442_v63, -inf }
 0x275   :  { %464 = vmax.xlane.f32.xlu0 %v463_v4 }
 0x2f5   :  { %v450_v7 = vpop.xlane.xlu1 %449 }
 0x2f6   :  { %v470_v6 = vsub.f32 %v437_v17, %v450_v7  ;;  %v447_v11 = vpop.xlane.xlu0 %446 }
 0x2f7   :  { %v469_v13 = vsub.f32 %v436_v16, %v447_v11 }
 0x2f8   :  { %v479_v14 = vmul.f32 1.442695, %v470_v6 }
 0x2f9   :  { %v477_v18 = vmul.f32 1.442695, %v469_v13  ;;  %v456_v19 = vpop.xlane.xlu1 %455 }
 0x2fa   :  { %2401 = vpow2.f32 %v479_v14  ;;  %v472_v59 = vsub.f32 %v439_v26, %v456_v19  ;;  %v453_v21 = vpop.xlane.xlu0 %452 }
 0x2fb   :  { %2403 = vpow2.f32 %v477_v18  ;;  %v471_v22 = vsub.f32 %v438_v29, %v453_v21 }
 0x2fc   :  { %v483_v24 = vmul.f32 1.442695, %v472_v59 }
 0x2fd   :  { %v481_v25 = vmul.f32 1.442695, %v471_v22  ;;  %v462_v28 = vpop.xlane.xlu1 %461  ;;  %v708_v22 = vld [vmem:[%s3234_s4] sm:$0xff] }
 0x2fe   :  { %2405 = vpow2.f32 %v483_v24  ;;  %v474_v31 = vsub.f32 %v441_v40, %v462_v28  ;;  %v459_v37 = vpop.xlane.xlu0 %458  ;;  %v709_v24 = vld [vmem:[%s3234_s4 + $0x8] sm:$0xff] }
 0x2ff   :  { %2407 = vpow2.f32 %v481_v25  ;;  %v473_v32 = vsub.f32 %v440_v46, %v459_v37  ;;  %v2253_v25 = vpack.c.bf16 %v709_v24, %v708_v22 }
 0x300   :  { %v487_v41 = vmul.f32 1.442695, %v474_v31 }
 0x301   :  { %v485_v17 = vmul.f32 1.442695, %v473_v32  ;;  %v468_v50 = vpop.xlane.xlu1 %467  ;;  %2254 = vmatprep.subr.bf16.mxu1 %v2253_v25 }
 0x302   :  { %2409 = vpow2.f32 %v487_v41  ;;  %v476_v16 = vsub.f32 %v443_v57, %v468_v50  ;;  %v465_v52 = vpop.xlane.xlu0 %464 }
 0x303   :  { %2411 = vpow2.f32 %v485_v17  ;;  %v475_v53 = vsub.f32 %v442_v63, %v465_v52  ;;  %v711_v52 = vld [vmem:[%s3234_s4 + $0x18] sm:$0xff] }
 0x304   :  { %v2402_v26 = vpop.eup %2401  ;;  %v491_v60 = vmul.f32 1.442695, %v476_v16  ;;  %v710_v16 = vld [vmem:[%s3234_s4 + $0x10] sm:$0xff] }
 0x305   :  { %v2404_v3 = vpop.eup %2403  ;;  %v489_v29 = vmul.f32 1.442695, %v475_v53  ;;  %v496_v4 = vsel %vm444_vm11, %v2402_v26, 0.0 }
 0x306   :  { %2413 = vpow2.f32 %v491_v60  ;;  %497 = vadd.xlane.f32.xlu1 %v496_v4  ;;  %v493_v40 = vsel %vm444_vm11, %v2404_v3, 0.0 }
 0x307   :  { %2415 = vpow2.f32 %v489_v29  ;;  %494 = vadd.xlane.f32.xlu0 %v493_v40 }
 0x308   :  { %v2406_v46 = vpop.eup %2405 }
 0x309   :  { %v2408_v7 = vpop.eup %2407  ;;  %v502_v6 = vsel %vm444_vm11, %v2406_v46, 0.0 }
 0x30a   :  { %503 = vadd.xlane.f32.xlu1 %v502_v6  ;;  %v499_v57 = vsel %vm444_vm11, %v2408_v7, 0.0  ;;  %v2257_v6 = vpack.c.bf16 %v711_v52, %v710_v16 }
 0x30b   :  { %500 = vadd.xlane.f32.xlu0 %v499_v57 }
 0x30c   :  { %v2410_v63 = vpop.eup %2409 }
 0x30d   :  { %v2412_v11 = vpop.eup %2411  ;;  %v508_v13 = vsel %vm444_vm11, %v2410_v63, 0.0 }
 0x30e   :  { %509 = vadd.xlane.f32.xlu1 %v508_v13  ;;  %v505_v14 = vsel %vm444_vm11, %v2412_v11, 0.0  ;;  %v712_v13 = vld [vmem:[%s3234_s4 + $0x20] sm:$0xff] }
 0x30f   :  { %506 = vadd.xlane.f32.xlu0 %v505_v14  ;;  %v713_v14 = vld [vmem:[%s3234_s4 + $0x28] sm:$0xff] }
 0x310   :  { %v2794_v18 = vpop.eup %2413 }
 0x311   :  { %v2796_v19 = vpop.eup %2415  ;;  %v514_v59 = vsel %vm444_vm11, %v2794_v18, 0.0 }
 0x312   :  { %515 = vadd.xlane.f32.xlu1 %v514_v59  ;;  %v511_v21 = vsel %vm444_vm11, %v2796_v19, 0.0 }
 0x313   :  { %512 = vadd.xlane.f32.xlu0 %v511_v21 }
 0x393   :  { %v498_v28 = vpop.xlane.xlu1 %497 }
 0x394   :  { %2417 = vrcp.f32 %v498_v28  ;;  %v495_v31 = vpop.xlane.xlu0 %494  ;;  %v714_v28 = vld [vmem:[%s3234_s4 + $0x30] sm:$0xff] }
 0x395   :  { %2419 = vrcp.f32 %v495_v31  ;;  %v715_v31 = vld [vmem:[%s3234_s4 + $0x38] sm:$0xff] }
 0x397   :  { %v504_v37 = vpop.xlane.xlu1 %503 }
 0x398   :  { %2421 = vrcp.f32 %v504_v37  ;;  %v501_v32 = vpop.xlane.xlu0 %500 }
 0x399   :  { %2423 = vrcp.f32 %v501_v32 }
 0x39b   :  { %v510_v41 = vpop.xlane.xlu1 %509 }
 0x39c   :  { %2425 = vrcp.f32 %v510_v41  ;;  %v507_v17 = vpop.xlane.xlu0 %506 }
 0x39d   :  { %2427 = vrcp.f32 %v507_v17 }
 0x39e   :  { %v2418_v50 = vpop.eup %2417 }
 0x39f   :  { %v2420_v53 = vpop.eup %2419  ;;  %v516_v60 = vpop.xlane.xlu1 %515  ;;  %v526_v40 = vmul.f32 %v2418_v50, %v2402_v26  ;;  %v2261_v26 = vpack.c.bf16 %v713_v14, %v712_v13  ;;  %v722_v14 = vld [vmem:[%s3234_s4 + $0x70] sm:$0xff] }
 0x3a0   :  { %2429 = vrcp.f32 %v516_v60  ;;  %v513_v29 = vpop.xlane.xlu0 %512  ;;  %v525_v4 = vmul.f32 %v2420_v53, %v2404_v3 }
 0x3a1   :  { %2431 = vrcp.f32 %v513_v29  ;;  %v718_v29 = vld [vmem:[%s3234_s4 + $0x50] sm:$0xff] }
 0x3a2   :  { %v2422_v57 = vpop.eup %2421  ;;  %2050 = vmatprep.mubr.msk.f32.mxu1 %vm444_vm11, %v525_v4 }
 0x3a3   :  { %v2424_v59 = vpop.eup %2423  ;;  %2051 = vmatmul.mubr.msk.f32.vlgmr.msra.gmra.mrb[2].mxu1 %vm444_vm11, %v526_v40  ;;  %v528_v21 = vmul.f32 %v2422_v57, %v2406_v46  ;;  %v721_v57 = vld [vmem:[%s3234_s4 + $0x68] sm:$0xff] }
 0x3a4   :  { %v527_v22 = vmul.f32 %v2424_v59, %v2408_v7  ;;  %2256 = vmatpush3.bf16.msra.mxu1 %v2253_v25  ;;  %v2265_v25 = vpack.c.bf16 %v715_v31, %v714_v28  ;;  %v723_v59 = vld [vmem:[%s3234_s4 + $0x78] sm:$0xff]  ;;  %v2877_v28 = vsel %vm2638_vm1, 1.0, %v2502_v15  ;;  %v2882_v31 = vsel %vm2667_vm3, 1.0, %v2502_v15 }
 0x3a5   :  { %2258 = vmatprep.subr.bf16.mxu1 %v2257_v6  ;;  %v685_v3 = vadd.f32 %v528_v21, %v526_v40 }
 0x3a6   :  { %v2426_v24 = vpop.eup %2425  ;;  %2053 = vmatprep.mubr.msk.f32.mxu1 %vm444_vm11, %v527_v22  ;;  %v684_v37 = vadd.f32 %v527_v22, %v525_v4  ;;  %v719_v4 = vld [vmem:[%s3234_s4 + $0x58] sm:$0xff] }
 0x3a7   :  { %v2428_v32 = vpop.eup %2427  ;;  %2054 = vmatmul.mubr.msk.f32.gmra.mrb[4].mxu1 %vm444_vm11, %v528_v21  ;;  %v530_v46 = vmul.f32 %v2426_v24, %v2410_v63  ;;  %v2273_v40 = vpack.c.bf16 %v719_v4, %v718_v29  ;;  %v2281_v21 = vpack.c.bf16 %v723_v59, %v722_v14  ;;  %v2872_v24 = vsel %vm2686_vm4, 1.0, %v2502_v15 }
 0x3a8   :  { %v529_v7 = vmul.f32 %v2428_v32, %v2412_v11  ;;  %2260 = vmatpush3.bf16.msra.mxu1 %v2257_v6  ;;  %v716_v11 = vld [vmem:[%s3234_s4 + $0x40] sm:$0xff] }
 0x3a9   :  { %2262 = vmatprep.subr.bf16.mxu1 %v2261_v26  ;;  %v689_v41 = vadd.f32 %v685_v3, %v530_v46  ;;  %v720_v6 = vld [vmem:[%s3234_s4 + $0x60] sm:$0xff]  ;;  %v2867_v3 = vsel %vm2661_vm2, 1.0, %v2502_v15 }
 0x3aa   :  { %v2430_v17 = vpop.eup %2429  ;;  %2056 = vmatprep.mubr.msk.f32.mxu1 %vm444_vm11, %v529_v7  ;;  %v688_v50 = vadd.f32 %v684_v37, %v529_v7  ;;  %v2277_v13 = vpack.c.bf16 %v721_v57, %v720_v6  ;;  %v804_v57 = vrot.slane %v2610_v44, %v803_v56 }
 0x3ab   :  { %v2432_v16 = vpop.eup %2431  ;;  %2057 = vmatmul.mubr.msk.f32.gmra.mrb[6].mxu1 %vm444_vm11, %v530_v46  ;;  %v532_v52 = vmul.f32 %v2430_v17, %v2794_v18  ;;  %v717_v18 = vld [vmem:[%s3234_s4 + $0x48] sm:$0xff] }
 0x3ac   :  { %v531_v53 = vmul.f32 %v2432_v16, %v2796_v19  ;;  %2264 = vmatpush3.bf16.msra.mxu1 %v2261_v26  ;;  %v2269_v19 = vpack.c.bf16 %v717_v18, %v716_v11  ;;  %v2908_v11 = vsel %vm2715_vm7, 1.0, %v2502_v15 }
 0x3ad   :  { %2266 = vmatprep.subr.bf16.mxu1 %v2265_v25  ;;  %v2834_v60 = vadd.f32 %v689_v41, %v532_v52 }
 0x3ae   :  { %2059 = vmatprep.mubr.msk.f32.mxu1 %vm444_vm11, %v531_v53  ;;  %v2837_v63 = vadd.f32 %v688_v50, %v531_v53  ;;  %v2903_v53 = vsel %vm2732_vm8, 1.0, %v2502_v15 }
 0x3af   :  { %2060 = vmatmul.mubr.msk.f32.gmra.mrb[8].mxu1 %vm444_vm11, %v532_v52  ;;  %vm1817_vm11 = vcmask 326656  }
 0x3b0   :  { %2268 = vmatpush3.bf16.msra.mxu1 %v2265_v25 }
 0x3b1   :  { %2270 = vmatprep.subr.bf16.mxu1 %v2269_v19 }
 0x3b4   :  { %2272 = vmatpush3.bf16.msra.mxu1 %v2269_v19 }
 0x3b5   :  { %2274 = vmatprep.subr.bf16.mxu1 %v2273_v40 }
 0x3b8   :  { %2276 = vmatpush3.bf16.msra.mxu1 %v2273_v40 }
 0x3b9   :  { %2278 = vmatprep.subr.bf16.mxu1 %v2277_v13 }
 0x3bc   :  { %2280 = vmatpush3.bf16.msra.mxu1 %v2277_v13 }
 0x3bd   :  { %2282 = vmatprep.subr.bf16.mxu1 %v2281_v21 }
 0x3c0   :  { %2284 = vmatpush3.bf16.msra.mxu1 %v2281_v21 }
 0x476   :  { %v2052_v22 = vpop.f32.mrb[2].mxu1 }
 0x477   :  { %v623_v26 = vpop.f32.mrb[3].mxu1  ;;  %v671_v27 = vmul.f32 %v2052_v22, %v2867_v3 }
 0x478   :  { %v670_v36 = vmul.f32 %v2877_v28, %v623_v26 }
 0x47a   :  { %v2055_v37 = vpop.f32.mrb[4].mxu1 }
 0x47b   :  { %v673_v32 = vmul.f32 %v2055_v37, %v2872_v24  ;;  %v633_v46 = vpop.f32.mrb[5].mxu1 }
 0x47c   :  { %v672_v7 = vmul.f32 %v2882_v31, %v633_v46  ;;  %v849_v46 = vld [vmem:[%s3232_s2 + $0x18] sm:$0xff] }
 0x47d   :  { %v683_v25 = vadd.f32 %v673_v32, %v671_v27 }
 0x47e   :  { %v682_v41 = vadd.f32 %v672_v7, %v670_v36  ;;  %v2058_v17 = vpop.f32.mrb[6].mxu1  ;;  %v850_v36 = vld [vmem:[%s3232_s2 + $0x50] sm:$0xff] }
 0x47f   :  { %v675_v50 = vmul.f32 %v2058_v17, %v2891_v2  ;;  %v643_v16 = vpop.f32.mrb[7].mxu1  ;;  %v2285_v7 = vpack.c.bf16 %v850_v36, %v849_v46 }
 0x480   :  { %v674_v52 = vmul.f32 %v2896_v30, %v643_v16  ;;  %v944_v16 = vld [vmem:[%s3232_s2 + $0x60] sm:$0xff] }
 0x481   :  { %v687_v49 = vadd.f32 %v683_v25, %v675_v50  ;;  %2286 = vmatprep.subr.bf16.mxu0 %v2285_v7  ;;  %v851_v25 = vld [vmem:[%s3232_s2 + $0x88] sm:$0xff] }
 0x482   :  { %v686_v39 = vadd.f32 %v682_v41, %v674_v52  ;;  %v2061_v18 = vpop.f32.mrb[8].mxu1  ;;  %v852_v41 = vld [vmem:[%s3232_s2 + $0xc0] sm:$0xff]  ;;  %2288 = vmatpush3.bf16.msra.mxu0 %v2285_v7  ;;  %v942_v50 = vld [vmem:[%s3232_s2 + $0x28] sm:$0xff] }
 0x483   :  { %v677_v19 = vmul.f32 %v2061_v18, %v2903_v53  ;;  %v653_v29 = vpop.f32.mrb[9].mxu1  ;;  %v2289_v17 = vpack.c.bf16 %v852_v41, %v851_v25  ;;  %v2293_v52 = vpack.c.bf16 %v944_v16, %v942_v50  ;;  %v941_v41 = vld [vmem:[%s3232_s2 + $0x20] sm:$0xff]  ;;  %v946_v50 = vld [vmem:[%s3232_s2 + $0x98] sm:$0xff]  ;;  %v948_v16 = vld [vmem:[%s3232_s2 + $0xd0] sm:$0xff] }
 0x484   :  { %v676_v4 = vmul.f32 %v2908_v11, %v653_v29 }
 0x485   :  { %v691_v40 = vadd.f32 %v687_v49, %v677_v19  ;;  %2290 = vmatprep.subr.bf16.mxu0 %v2289_v17 }
 0x486   :  { %v690_v6 = vadd.f32 %v686_v39, %v676_v4  ;;  %2292 = vmatpush3.bf16.msra.mxu0 %v2289_v17  ;;  %v943_v17 = vld [vmem:[%s3232_s2 + $0x58] sm:$0xff] }
 0x487   :  { %2294 = vmatprep.subr.bf16.mxu0 %v2293_v52 }
 0x488   :  { %2094 = vmatprep.mubr.f32.mxu1 %v690_v6 }
 0x489   :  { %2095 = vmatmul.mubr.f32.vlgmr.msra.gmra.mrb[10].mxu1 %v691_v40 }
 0x55c   :  { %v2096_v13 = vpop.f32.mrb[10].mxu1 }
 0x55d   :  { %v800_v51 = vadd.f32 %v2096_v13, %v2548_v0  ;;  %v790_v14 = vpop.f32.mrb[11].mxu1 }
 0x55e   :  { %v799_v59 = vadd.f32 %v790_v14, %v2553_v1 }
 0x55f   :  { %v2916_v21 = vadd.f32 %v804_v57, %v800_v51 }
 0x560   :  { %v2918_v22 = vadd.f32 %v804_v57, %v799_v59 }
 0x561   :  { %v810_v26 = vsel %vm32_vm0, %v2916_v21, 0.0  ;;  %v816_v37 = vmul.f32 %v2916_v21, %v2916_v21 }
 0x562   :  { %811 = vadd.xlane.f32.xlu1 %v810_v26  ;;  %v807_v27 = vsel %vm32_vm0, %v2918_v22, 0.0  ;;  %v815_v0 = vmul.f32 %v2918_v22, %v2918_v22  ;;  %v845_v26 = vsub.s32 3, %v2602_v42 }
 0x563   :  { %808 = vadd.xlane.f32.xlu0 %v807_v27  ;;  %v820_v1 = vsel %vm32_vm0, %v816_v37, 0.0  ;;  %v840_v37 = vrot.slane %v2610_v44, %v100_v62 }
 0x564   :  { %v817_v32 = vsel %vm32_vm0, %v815_v0, 0.0  ;;  %v846_v7 = vrot.slane %v2610_v44, %v845_v26  ;;  %v2295_v44 = vpack.c.bf16 %v943_v17, %v941_v41 }
 0x566   :  { %821 = vadd.xlane.f32.xlu1 %v820_v1 }
 0x567   :  { %818 = vadd.xlane.f32.xlu0 %v817_v32 }
 0x5ef   :  { %v812_v49 = vpop.xlane.xlu1 %811 }
 0x5f0   :  { %v814_v39 = vmul.f32 0.03125, %v812_v49  ;;  %v809_v18 = vpop.xlane.xlu0 %808 }
 0x5f1   :  { %v813_v19 = vmul.f32 0.03125, %v809_v18  ;;  %v945_v18 = vld [vmem:[%s3232_s2 + $0x90] sm:$0xff] }
 0x5f2   :  { %v826_v4 = vmul.f32 %v814_v39, %v814_v39  ;;  %v830_v27 = vsub.f32 %v2916_v21, %v814_v39  ;;  %v2297_v39 = vpack.c.bf16 %v948_v16, %v946_v50 }
 0x5f3   :  { %v822_v29 = vpop.xlane.xlu1 %821  ;;  %v825_v56 = vmul.f32 %v813_v19, %v813_v19  ;;  %v829_v1 = vsub.f32 %v2918_v22, %v813_v19  ;;  %v947_v19 = vld [vmem:[%s3232_s2 + $0xc8] sm:$0xff] }
 0x5f4   :  { %v824_v40 = vmul.f32 0.03125, %v822_v29  ;;  %v819_v6 = vpop.xlane.xlu0 %818  ;;  %v2299_v29 = vpack.c.bf16 %v947_v19, %v945_v18 }
 0x5f5   :  { %v823_v57 = vmul.f32 0.03125, %v819_v6  ;;  %v30_v6 = vld [vmem:[%s3231_s1 + $0x10] sm:$0xff] }
 0x5f6   :  { %v828_v13 = vsub.f32 %v824_v40, %v826_v4  ;;  %v28_v4 = vld [vmem:[%s3231_s1] sm:$0xff]  ;;  %v29_v40 = vld [vmem:[%s3231_s1 + $0x8] sm:$0xff] }
 0x5f7   :  { %v827_v51 = vsub.f32 %v823_v57, %v825_v56  ;;  %v31_v56 = vld [vmem:[%s3231_s1 + $0x18] sm:$0xff]  ;;  %v1853_v57 = vld [vmem:[%s3233_s3 + $0x3] ss:$0 sm:$0xff]  ;;  %s2507_s1 = smov [#allocation2]  }
 0x5f8   :  { %v832_v14 = vadd.f32 1e-05, %v828_v13  ;;  %s1830_s21 = sshll.u32 %s2507_s1, 4  ;;  %s1831_s21 = int_to_ptr.vmem [resolvable:$true] %s1830_s21 }
 0x5f9   :  { %v831_v59 = vadd.f32 1e-05, %v827_v51  ;;  %p2483_p1 = scmp.lt.s32.totalorder %s1831_s21, %s1831_s21 }
 0x5fa   :  { %2433 = vrsqrt.f32 %v832_v14 }
 0x5fb   :  { %2435 = vrsqrt.f32 %v831_v59 }
 0x604   :  { %v2434_v0 = vpop.eup %2433 }
 0x605   :  { %v2436_v32 = vpop.eup %2435  ;;  %v836_v46 = vmul.f32 %v2434_v0, %v830_v27 }
 0x606   :  { %v835_v36 = vmul.f32 %v2436_v32, %v829_v1 }
 0x607   :  { %v842_v25 = vmul.f32 %v840_v37, %v836_v46 }
 0x608   :  { %v841_v62 = vmul.f32 %v840_v37, %v835_v36 }
 0x609   :  { %v848_v49 = vadd.f32 %v846_v7, %v842_v25 }
 0x60a   :  { %v847_v52 = vadd.f32 %v846_v7, %v841_v62 }
 0x60c   :  { %2105 = vmatprep.mubr.msk.f32.mxu0 %vm32_vm0, %v847_v52 }
 0x60d   :  { %2106 = vmatmul.mubr.msk.f32.vlgmr.msra.gmra.mrb[12].mxu0 %vm32_vm0, %v848_v49 }
 0x60e   :  { %2296 = vmatpush1.bf16.msra.mxu0 %v2295_v44  ;;  %1037 = vmatprep.mubr.f32.mxu0 %v2502_v15 }
 0x60f   :  { %2298 = vmatprep.subr.bf16.mxu0 %v2297_v39 }
 0x612   :  { %2300 = vmatpush1.bf16.msra.mxu0 %v2299_v29 }
 0x615   :  { %1856 = vmatmul.mubr.msk.f32.vlgmr.msra.gmra.mrb[14].mxu0 %vm32_vm0, %v28_v4 }
 0x616   :  { %1043 = vmatprep.mubr.f32.mxu0 %v2502_v15 }
 0x619   :  { %1857 = vmatmul.mubr.msk.f32.gmra.mrb[16].mxu0 %vm32_vm0, %v29_v40 }
 0x61a   :  { %1049 = vmatprep.mubr.f32.mxu0 %v2502_v15 }
 0x61d   :  { %1858 = vmatmul.mubr.msk.f32.gmra.mrb[18].mxu0 %vm32_vm0, %v30_v6 }
 0x61e   :  { %1055 = vmatprep.mubr.f32.mxu0 %v2502_v15  ;;  %v949_v15 = vld [vmem:[%s3233_s3 + $0x4] sm:$0x3] }
 0x61f   :  { %v954_v37 = vrot.slane %v949_v15, %v2605_v43  ;;  %v958_v0 = vrot.slane %v949_v15, %v2613_v45 }
 0x621   :  { %1859 = vmatmul.mubr.msk.f32.gmra.mrb[20].mxu0 %vm32_vm0, %v31_v56 }
 0x6e0   :  { %v2107_v13 = vpop.f32.mrb[12].mxu0 }
 0x6e1   :  { %v932_v51 = vpop.f32.mrb[13].mxu0  ;;  %v938_v19 = vadd.f32 %v2107_v13, %v1853_v57 }
 0x6e2   :  { %v933_v14 = vadd.f32 %v1853_v57, %v932_v51 }
 0x6e3   :  { %v1063_v29 = vmul.f32 %v938_v19, %v2678_v34  ;;  %v1065_v40 = vmul.f32 %v938_v19, %v2702_v47  ;;  %v1067_v56 = vmul.f32 %v938_v19, %v2724_v54  ;;  %v1069_v57 = vmul.f32 %v938_v19, %v2741_v61 }
 0x6e4   :  { %v1062_v59 = vmul.f32 %v933_v14, %v2647_v5  ;;  %v1064_v4 = vmul.f32 %v933_v14, %v2683_v35  ;;  %v1066_v6 = vmul.f32 %v933_v14, %v2707_v48  ;;  %v1068_v51 = vmul.f32 %v933_v14, %v2729_v55 }
 0x6e5   :  { %v1175_v34 = vshra.s32 %v2626_v58, 4 }
 0x6e6   :  { %2116 = vmatprep.mubr.f32.mxu0 %v1062_v59 }
 0x6e7   :  { %vm1177_vm1 = vcmp.eq.s32.totalorder %v2745_v8, %v1175_v34  ;;  %vm1176_vm2 = vcmp.eq.s32.totalorder %v2747_v9, %v1175_v34  ;;  %vm1179_vm3 = vcmp.eq.s32.totalorder %v2750_v10, %v1175_v34  ;;  %vm1178_vm4 = vcmp.eq.s32.totalorder %v2756_v12, %v1175_v34 }
 0x6e8   :  { %v1039_v26 = vpop.f32.mrb[14].mxu0  ;;  %vm1181_vm5 = vcmp.eq.s32.totalorder %v2762_v20, %v1175_v34  ;;  %vm1180_vm6 = vcmp.eq.s32.totalorder %v2767_v23, %v1175_v34  ;;  %vm1183_vm7 = vcmp.eq.s32.totalorder %v2773_v33, %v1175_v34  ;;  %vm1182_vm8 = vcmp.eq.s32.totalorder %v2778_v38, %v1175_v34 }
 0x6e9   :  { %v1041_v27 = vpop.f32.mrb[15].mxu0  ;;  %v1040_v32 = vadd.f32 %v1039_v26, %v954_v37 }
 0x6ea   :  { %v1042_v7 = vadd.f32 %v1041_v27, %v958_v0 }
 0x6ec   :  { %v1045_v1 = vpop.f32.mrb[16].mxu0 }
 0x6ed   :  { %v1046_v46 = vadd.f32 %v1045_v1, %v954_v37  ;;  %v1047_v36 = vpop.f32.mrb[17].mxu0 }
 0x6ee   :  { %v1048_v25 = vadd.f32 %v1047_v36, %v958_v0 }
 0x6ef   :  { %v2301_v41 = vpack.c.bf16 %v1046_v46, %v1040_v32 }
 0x6f0   :  { %v2309_v17 = vpack.c.bf16 %v1048_v25, %v1042_v7  ;;  %v1051_v5 = vpop.f32.mrb[18].mxu0 }
 0x6f1   :  { %v1053_v62 = vpop.f32.mrb[19].mxu0  ;;  %2302 = vmatprep.subr.bf16.mxu0 %v2301_v41  ;;  %v1052_v16 = vadd.f32 %v1051_v5, %v954_v37 }
 0x6f2   :  { %2304 = vmatpush3.bf16.xpose.msra.mxu0 %v2301_v41  ;;  %2310 = vmatprep.subr.bf16.mxu1 %v2309_v17  ;;  %v1054_v49 = vadd.f32 %v1053_v62, %v958_v0 }
 0x6f3   :  { %2312 = vmatpush3.bf16.msra.mxu1 %v2309_v17 }
 0x6f4   :  { %v1057_v50 = vpop.f32.mrb[20].mxu0 }
 0x6f5   :  { %v1058_v52 = vadd.f32 %v1057_v50, %v954_v37  ;;  %v1059_v44 = vpop.f32.mrb[21].mxu0 }
 0x6f6   :  { %v1060_v45 = vadd.f32 %v1059_v44, %v958_v0 }
 0x6f7   :  { %v2305_v39 = vpack.c.bf16 %v1058_v52, %v1052_v16 }
 0x6f8   :  { %v2313_v18 = vpack.c.bf16 %v1060_v45, %v1054_v49 }
 0x6f9   :  { %2306 = vmatprep.subr.bf16.mxu0 %v2305_v39 }
 0x6fa   :  { %2308 = vmatpush3.bf16.xpose.msra.mxu0 %v2305_v39  ;;  %2314 = vmatprep.subr.bf16.mxu1 %v2313_v18 }
 0x6fb   :  { %2316 = vmatpush3.bf16.msra.mxu1 %v2313_v18 }
 0x701   :  { %2117 = vmatmul.mubr.f32.vlgmr.msra.gmra.mrb[22].mxu0 %v1063_v29 }
 0x702   :  { %2119 = vmatprep.mubr.f32.mxu0 %v1064_v4 }
 0x705   :  { %2120 = vmatmul.mubr.f32.gmra.mrb[24].mxu0 %v1065_v40 }
 0x706   :  { %2122 = vmatprep.mubr.f32.mxu0 %v1066_v6 }
 0x709   :  { %2123 = vmatmul.mubr.f32.gmra.mrb[26].mxu0 %v1067_v56 }
 0x70a   :  { %2125 = vmatprep.mubr.f32.mxu0 %v1068_v51 }
 0x70d   :  { %2126 = vmatmul.mubr.f32.gmra.mrb[28].mxu0 %v1069_v57 }
 0x7d4   :  { %v2118_v35 = vpop.f32.mrb[22].mxu0 }
 0x7d5   :  { %v1185_v47 = vsel %vm1177_vm1, %v2118_v35, -1e+30  ;;  %v1136_v48 = vpop.f32.mrb[23].mxu0 }
 0x7d6   :  { %v1184_v13 = vsel %vm1176_vm2, %v1136_v48, -1e+30  ;;  %v1195_v59 = vsel %vm32_vm0, %v1185_v47, -inf }
 0x7d7   :  { %1196 = vmax.xlane.f32.xlu1 %v1195_v59  ;;  %v1192_v54 = vsel %vm32_vm0, %v1184_v13, -inf }
 0x7d8   :  { %1193 = vmax.xlane.f32.xlu0 %v1192_v54  ;;  %v2121_v55 = vpop.f32.mrb[24].mxu0 }
 0x7d9   :  { %v1187_v58 = vsel %vm1179_vm3, %v2121_v55, -1e+30  ;;  %v1146_v61 = vpop.f32.mrb[25].mxu0 }
 0x7da   :  { %v1186_v8 = vsel %vm1178_vm4, %v1146_v61, -1e+30  ;;  %v1201_v9 = vsel %vm32_vm0, %v1187_v58, -inf }
 0x7db   :  { %1202 = vmax.xlane.f32.xlu1 %v1201_v9  ;;  %v1198_v14 = vsel %vm32_vm0, %v1186_v8, -inf }
 0x7dc   :  { %1199 = vmax.xlane.f32.xlu0 %v1198_v14  ;;  %v2124_v10 = vpop.f32.mrb[26].mxu0 }
 0x7dd   :  { %v1189_v15 = vsel %vm1181_vm5, %v2124_v10, -1e+30  ;;  %v1156_v26 = vpop.f32.mrb[27].mxu0 }
 0x7de   :  { %v1188_v37 = vsel %vm1180_vm6, %v1156_v26, -1e+30  ;;  %v1207_v12 = vsel %vm32_vm0, %v1189_v15, -inf  ;;  %v1868_v26 = vld [vmem:[%s3234_s4 + $0x80] sm:$0xff] }
 0x7df   :  { %1208 = vmax.xlane.f32.xlu1 %v1207_v12  ;;  %v1204_v27 = vsel %vm32_vm0, %v1188_v37, -inf }
 0x7e0   :  { %1205 = vmax.xlane.f32.xlu0 %v1204_v27  ;;  %v2127_v20 = vpop.f32.mrb[28].mxu0 }
 0x7e1   :  { %v1191_v0 = vsel %vm1183_vm7, %v2127_v20, -1e+30  ;;  %v1166_v1 = vpop.f32.mrb[29].mxu0 }
 0x7e2   :  { %v1190_v32 = vsel %vm1182_vm8, %v1166_v1, -1e+30  ;;  %v1213_v23 = vsel %vm32_vm0, %v1191_v0, -inf }
 0x7e3   :  { %1214 = vmax.xlane.f32.xlu1 %v1213_v23  ;;  %v1210_v46 = vsel %vm32_vm0, %v1190_v32, -inf }
 0x7e4   :  { %1211 = vmax.xlane.f32.xlu0 %v1210_v46 }
 0x864   :  { %v1197_v36 = vpop.xlane.xlu1 %1196 }
 0x865   :  { %v1217_v7 = vsub.f32 %v1185_v47, %v1197_v36  ;;  %v1194_v25 = vpop.xlane.xlu0 %1193  ;;  %v1870_v36 = vld [vmem:[%s3234_s4 + $0x90] sm:$0xff] }
 0x866   :  { %v1216_v33 = vsub.f32 %v1184_v13, %v1194_v25 }
 0x867   :  { %v1226_v41 = vmul.f32 1.442695, %v1217_v7  ;;  %v1871_v7 = vld [vmem:[%s3234_s4 + $0x98] sm:$0xff] }
 0x868   :  { %v1224_v17 = vmul.f32 1.442695, %v1216_v33  ;;  %v1203_v5 = vpop.xlane.xlu1 %1202 }
 0x869   :  { %2437 = vpow2.f32 %v1226_v41  ;;  %v1219_v38 = vsub.f32 %v1187_v58, %v1203_v5  ;;  %v1200_v62 = vpop.xlane.xlu0 %1199 }
 0x86a   :  { %2439 = vpow2.f32 %v1224_v17  ;;  %v1218_v50 = vsub.f32 %v1186_v8, %v1200_v62 }
 0x86b   :  { %v1230_v16 = vmul.f32 1.442695, %v1219_v38  ;;  %v2321_v38 = vpack.c.bf16 %v1871_v7, %v1870_v36 }
 0x86c   :  { %v1228_v52 = vmul.f32 1.442695, %v1218_v50  ;;  %v1209_v44 = vpop.xlane.xlu1 %1208  ;;  %v1872_v50 = vld [vmem:[%s3234_s4 + $0xa0] sm:$0xff] }
 0x86d   :  { %2441 = vpow2.f32 %v1230_v16  ;;  %v1221_v49 = vsub.f32 %v1189_v15, %v1209_v44  ;;  %v1206_v45 = vpop.xlane.xlu0 %1205  ;;  %v1873_v16 = vld [vmem:[%s3234_s4 + $0xa8] sm:$0xff] }
 0x86e   :  { %2443 = vpow2.f32 %v1228_v52  ;;  %v1220_v39 = vsub.f32 %v1188_v37, %v1206_v45  ;;  %v1869_v37 = vld [vmem:[%s3234_s4 + $0x88] sm:$0xff]  ;;  %v2325_v45 = vpack.c.bf16 %v1873_v16, %v1872_v50 }
 0x86f   :  { %v1234_v18 = vmul.f32 1.442695, %v1221_v49  ;;  %v2317_v12 = vpack.c.bf16 %v1869_v37, %v1868_v26  ;;  %v1882_v37 = vld [vmem:[%s3234_s4 + $0xf0] sm:$0xff] }
 0x870   :  { %v1232_v19 = vmul.f32 1.442695, %v1220_v39  ;;  %v1215_v29 = vpop.xlane.xlu1 %1214 }
 0x871   :  { %2445 = vpow2.f32 %v1234_v18  ;;  %v1223_v4 = vsub.f32 %v1191_v0, %v1215_v29  ;;  %v1212_v40 = vpop.xlane.xlu0 %1211  ;;  %2318 = vmatprep.subr.bf16.mxu1 %v2317_v12  ;;  %v1875_v29 = vld [vmem:[%s3234_s4 + $0xb8] sm:$0xff] }
 0x872   :  { %2447 = vpow2.f32 %v1232_v19  ;;  %v1222_v6 = vsub.f32 %v1190_v32, %v1212_v40  ;;  %v1874_v19 = vld [vmem:[%s3234_s4 + $0xb0] sm:$0xff] }
 0x873   :  { %v2438_v56 = vpop.eup %2437  ;;  %v1238_v51 = vmul.f32 1.442695, %v1223_v4 }
 0x874   :  { %v2440_v57 = vpop.eup %2439  ;;  %v1236_v34 = vmul.f32 1.442695, %v1222_v6  ;;  %v1243_v35 = vsel %vm32_vm0, %v2438_v56, 0.0 }
 0x875   :  { %2449 = vpow2.f32 %v1238_v51  ;;  %1244 = vadd.xlane.f32.xlu1 %v1243_v35  ;;  %v1240_v47 = vsel %vm32_vm0, %v2440_v57, 0.0  ;;  %v2329_v51 = vpack.c.bf16 %v1875_v29, %v1874_v19 }
 0x876   :  { %2451 = vpow2.f32 %v1236_v34  ;;  %1241 = vadd.xlane.f32.xlu0 %v1240_v47 }
 0x877   :  { %v2442_v48 = vpop.eup %2441 }
 0x878   :  { %v2444_v13 = vpop.eup %2443  ;;  %v1249_v59 = vsel %vm32_vm0, %v2442_v48, 0.0 }
 0x879   :  { %1250 = vadd.xlane.f32.xlu1 %v1249_v59  ;;  %v1246_v54 = vsel %vm32_vm0, %v2444_v13, 0.0 }
 0x87a   :  { %1247 = vadd.xlane.f32.xlu0 %v1246_v54 }
 0x87b   :  { %v2446_v55 = vpop.eup %2445 }
 0x87c   :  { %v2448_v58 = vpop.eup %2447  ;;  %v1255_v61 = vsel %vm32_vm0, %v2446_v55, 0.0 }
 0x87d   :  { %1256 = vadd.xlane.f32.xlu1 %v1255_v61  ;;  %v1252_v8 = vsel %vm32_vm0, %v2448_v58, 0.0 }
 0x87e   :  { %1253 = vadd.xlane.f32.xlu0 %v1252_v8  ;;  %v1878_v8 = vld [vmem:[%s3234_s4 + $0xd0] sm:$0xff] }
 0x87f   :  { %v3034_v9 = vpop.eup %2449 }
 0x880   :  { %v3036_v14 = vpop.eup %2451  ;;  %v1261_v10 = vsel %vm32_vm0, %v3034_v9, 0.0 }
 0x881   :  { %1262 = vadd.xlane.f32.xlu1 %v1261_v10  ;;  %v1258_v15 = vsel %vm32_vm0, %v3036_v14, 0.0  ;;  %v1880_v10 = vld [vmem:[%s3234_s4 + $0xe0] sm:$0xff] }
 0x882   :  { %1259 = vadd.xlane.f32.xlu0 %v1258_v15  ;;  %v1881_v15 = vld [vmem:[%s3234_s4 + $0xe8] sm:$0xff] }
 0x883   :  { %v2341_v26 = vpack.c.bf16 %v1881_v15, %v1880_v10 }
 0x902   :  { %v1245_v27 = vpop.xlane.xlu1 %1244 }
 0x903   :  { %2453 = vrcp.f32 %v1245_v27  ;;  %v1242_v20 = vpop.xlane.xlu0 %1241 }
 0x904   :  { %2455 = vrcp.f32 %v1242_v20 }
 0x906   :  { %v1251_v0 = vpop.xlane.xlu1 %1250 }
 0x907   :  { %2457 = vrcp.f32 %v1251_v0  ;;  %v1248_v1 = vpop.xlane.xlu0 %1247 }
 0x908   :  { %2459 = vrcp.f32 %v1248_v1 }
 0x90a   :  { %v1257_v32 = vpop.xlane.xlu1 %1256 }
 0x90b   :  { %2461 = vrcp.f32 %v1257_v32  ;;  %v1254_v23 = vpop.xlane.xlu0 %1253 }
 0x90c   :  { %2463 = vrcp.f32 %v1254_v23 }
 0x90d   :  { %v2454_v46 = vpop.eup %2453 }
 0x90e   :  { %v2456_v25 = vpop.eup %2455  ;;  %v1263_v33 = vpop.xlane.xlu1 %1262  ;;  %v1273_v5 = vmul.f32 %v2454_v46, %v2438_v56 }
 0x90f   :  { %2465 = vrcp.f32 %v1263_v33  ;;  %v1260_v41 = vpop.xlane.xlu0 %1259  ;;  %v1272_v17 = vmul.f32 %v2456_v25, %v2440_v57 }
 0x910   :  { %2467 = vrcp.f32 %v1260_v41 }
 0x911   :  { %v2458_v62 = vpop.eup %2457  ;;  %2136 = vmatprep.mubr.msk.f32.mxu1 %vm32_vm0, %v1272_v17 }
 0x912   :  { %v2460_v52 = vpop.eup %2459  ;;  %2137 = vmatmul.mubr.msk.f32.vlgmr.msra.gmra.mrb[12].mxu1 %vm32_vm0, %v1273_v5  ;;  %v1275_v44 = vmul.f32 %v2458_v62, %v2442_v48 }
 0x913   :  { %v1274_v49 = vmul.f32 %v2460_v52, %v2444_v13  ;;  %2320 = vmatpush3.bf16.msra.mxu1 %v2317_v12  ;;  %v1883_v12 = vld [vmem:[%s3234_s4 + $0xf8] sm:$0xff] }
 0x914   :  { %2322 = vmatprep.subr.bf16.mxu1 %v2321_v38  ;;  %v1424_v39 = vadd.f32 %v1275_v44, %v1273_v5  ;;  %v2345_v27 = vpack.c.bf16 %v1883_v12, %v1882_v37 }
 0x915   :  { %v2462_v18 = vpop.eup %2461  ;;  %2139 = vmatprep.mubr.msk.f32.mxu1 %vm32_vm0, %v1274_v49  ;;  %v1423_v4 = vadd.f32 %v1274_v49, %v1272_v17 }
 0x916   :  { %v2464_v40 = vpop.eup %2463  ;;  %2140 = vmatmul.mubr.msk.f32.gmra.mrb[14].mxu1 %vm32_vm0, %v1275_v44  ;;  %v1277_v6 = vmul.f32 %v2462_v18, %v2446_v55  ;;  %v1876_v55 = vld [vmem:[%s3234_s4 + $0xc0] sm:$0xff] }
 0x917   :  { %v1276_v56 = vmul.f32 %v2464_v40, %v2448_v58  ;;  %2324 = vmatpush3.bf16.msra.mxu1 %v2321_v38  ;;  %v1877_v58 = vld [vmem:[%s3234_s4 + $0xc8] sm:$0xff] }
 0x918   :  { %2326 = vmatprep.subr.bf16.mxu1 %v2325_v45  ;;  %v1428_v57 = vadd.f32 %v1424_v39, %v1277_v6  ;;  %v2333_v61 = vpack.c.bf16 %v1877_v58, %v1876_v55 }
 0x919   :  { %v2466_v34 = vpop.eup %2465  ;;  %2142 = vmatprep.mubr.msk.f32.mxu1 %vm32_vm0, %v1276_v56  ;;  %v1427_v35 = vadd.f32 %v1423_v4, %v1276_v56 }
 0x91a   :  { %v2468_v47 = vpop.eup %2467  ;;  %2143 = vmatmul.mubr.msk.f32.gmra.mrb[16].mxu1 %vm32_vm0, %v1277_v6  ;;  %v1279_v48 = vmul.f32 %v2466_v34, %v3034_v9  ;;  %v1879_v9 = vld [vmem:[%s3234_s4 + $0xd8] sm:$0xff]  ;;  %v695_v6 = vmul.f32 0.25, %v2834_v60  ;;  %v1589_v34 = vld [vmem:[%s3232_s2 + $0x30] sm:$0xff]  ;;  %v1590_v60 = vld [vmem:[%s3232_s2 + $0x68] sm:$0xff] }
 0x91b   :  { %v1278_v13 = vmul.f32 %v2468_v47, %v3036_v14  ;;  %2328 = vmatpush3.bf16.msra.mxu1 %v2325_v45  ;;  %v2337_v14 = vpack.c.bf16 %v1879_v9, %v1878_v8  ;;  %v1591_v47 = vld [vmem:[%s3232_s2 + $0xa0] sm:$0xff] }
 0x91c   :  { %2330 = vmatprep.subr.bf16.mxu1 %v2329_v51  ;;  %v3074_v59 = vadd.f32 %v1428_v57, %v1279_v48 }
 0x91d   :  { %2145 = vmatprep.mubr.msk.f32.mxu1 %vm32_vm0, %v1278_v13  ;;  %v3077_v54 = vadd.f32 %v1427_v35, %v1278_v13  ;;  %v2349_v35 = vpack.c.bf16 %v1590_v60, %v1589_v34  ;;  %v1900_v34 = vld [vmem:[%s3234_s4 + $0x168] sm:$0xff] }
 0x91e   :  { %2146 = vmatmul.mubr.msk.f32.gmra.mrb[18].mxu1 %vm32_vm0, %v1279_v48  ;;  %v1434_v57 = vmul.f32 0.25, %v3074_v59 }
 0x91f   :  { %2332 = vmatpush3.bf16.msra.mxu1 %v2329_v51  ;;  %v1433_v56 = vmul.f32 0.25, %v3077_v54  ;;  %v694_v51 = vmul.f32 0.25, %v2837_v63  ;;  %v1592_v63 = vld [vmem:[%s3232_s2 + $0xd8] sm:$0xff]  ;;  %s2505_s2 = smov 32  }
 0x920   :  { %2334 = vmatprep.subr.bf16.mxu1 %v2333_v61  ;;  %v2353_v48 = vpack.c.bf16 %v1592_v63, %v1591_v47  ;;  %v1902_v47 = vld [vmem:[%s3234_s4 + $0x178] sm:$0xff] }
 0x923   :  { %2336 = vmatpush3.bf16.msra.mxu1 %v2333_v61 }
 0x924   :  { %2338 = vmatprep.subr.bf16.mxu1 %v2337_v14 }
 0x927   :  { %2340 = vmatpush3.bf16.msra.mxu1 %v2337_v14 }
 0x928   :  { %2342 = vmatprep.subr.bf16.mxu1 %v2341_v26 }
 0x92b   :  { %2344 = vmatpush3.bf16.msra.mxu1 %v2341_v26 }
 0x92c   :  { %2346 = vmatprep.subr.bf16.mxu1 %v2345_v27 }
 0x92f   :  { %2348 = vmatpush3.bf16.msra.mxu1 %v2345_v27 }
 0x930   :  { %2350 = vmatprep.subr.bf16.mxu1 %v2349_v35 }
 0x9e5   :  { %v2138_v20 = vpop.f32.mrb[12].mxu1 }
 0x9e6   :  { %v1370_v0 = vpop.f32.mrb[13].mxu1  ;;  %v1410_v32 = vmul.f32 %v2138_v20, %v2867_v3 }
 0x9e7   :  { %v1409_v36 = vmul.f32 %v1370_v0, %v2877_v28 }
 0x9e9   :  { %v2141_v1 = vpop.f32.mrb[14].mxu1 }
 0x9ea   :  { %v1412_v23 = vmul.f32 %v2141_v1, %v2872_v24  ;;  %v1380_v46 = vpop.f32.mrb[15].mxu1 }
 0x9eb   :  { %v1411_v7 = vmul.f32 %v1380_v46, %v2882_v31  ;;  %v1543_v31 = vsub.s32 7, %v2602_v42 }
 0x9ec   :  { %v1422_v25 = vadd.f32 %v1412_v23, %v1410_v32 }
 0x9ed   :  { %v1421_v33 = vadd.f32 %v1411_v7, %v1409_v36  ;;  %v2144_v41 = vpop.f32.mrb[16].mxu1  ;;  %v1579_v36 = vsub.s32 4, %v2602_v42 }
 0x9ee   :  { %v1414_v17 = vmul.f32 %v2144_v41, %v2891_v2  ;;  %v1390_v5 = vpop.f32.mrb[17].mxu1  ;;  %v3116_v2 = vld [vmem:[%s3235_s5] sm:$0xff] }
 0x9ef   :  { %v1413_v38 = vmul.f32 %v1390_v5, %v2896_v30  ;;  %v1544_v30 = vrot.slane %v3116_v2, %v1543_v31  ;;  %v1580_v41 = vrot.slane %v3116_v2, %v1579_v36 }
 0x9f0   :  { %v1426_v62 = vadd.f32 %v1422_v25, %v1414_v17  ;;  %v1585_v25 = vsub.s32 5, %v2602_v42  ;;  %v1887_v42 = vld [vmem:[%s3234_s4 + $0x100] sm:$0xff] }
 0x9f1   :  { %v1425_v50 = vadd.f32 %v1421_v33, %v1413_v38  ;;  %v2147_v16 = vpop.f32.mrb[18].mxu1 }
 0x9f2   :  { %v1416_v3 = vmul.f32 %v2147_v16, %v2903_v53  ;;  %v1400_v52 = vpop.f32.mrb[19].mxu1  ;;  %v1586_v16 = vrot.slane %v3116_v2, %v1585_v25  ;;  %v1889_v2 = vld [vmem:[%s3234_s4 + $0x110] sm:$0xff] }
 0x9f3   :  { %v1415_v24 = vmul.f32 %v1400_v52, %v2908_v11 }
 0x9f4   :  { %v1430_v44 = vadd.f32 %v1426_v62, %v1416_v3 }
 0x9f5   :  { %v1429_v28 = vadd.f32 %v1425_v50, %v1415_v24 }
 0x9f7   :  { %2180 = vmatprep.mubr.f32.mxu1 %v1429_v28  ;;  %v1888_v28 = vld [vmem:[%s3234_s4 + $0x108] sm:$0xff] }
 0x9f8   :  { %2181 = vmatmul.mubr.f32.vlgmr.msra.gmra.mrb[20].mxu1 %v1430_v44  ;;  %v2357_v31 = vpack.c.bf16 %v1888_v28, %v1887_v42 }
 0x9f9   :  { %2352 = vmatpush3.bf16.msra.mxu1 %v2349_v35  ;;  %v1901_v35 = vld [vmem:[%s3234_s4 + $0x170] sm:$0xff] }
 0x9fa   :  { %2354 = vmatprep.subr.bf16.mxu1 %v2353_v48  ;;  %2358 = vmatprep.subr.bf16.mxu0 %v2357_v31  ;;  %v2385_v63 = vpack.c.bf16 %v1902_v47, %v1901_v35 }
 0x9fb   :  { %2360 = vmatpush3.bf16.msra.mxu0 %v2357_v31 }
 0x9fd   :  { %2356 = vmatpush3.bf16.msra.mxu1 %v2353_v48  ;;  %v1884_v48 = vld [vmem:[%s3233_s3 + $0x6] ss:$0 sm:$0xff] }
 0xacb   :  { %v2182_v49 = vpop.f32.mrb[20].mxu1 }
 0xacc   :  { %v1540_v45 = vadd.f32 %v2182_v49, %v2916_v21  ;;  %v1530_v53 = vpop.f32.mrb[21].mxu1 }
 0xacd   :  { %v1539_v39 = vadd.f32 %v1530_v53, %v2918_v22  ;;  %v1892_v53 = vld [vmem:[%s3234_s4 + $0x128] sm:$0xff] }
 0xace   :  { %v3121_v11 = vadd.f32 %v1544_v30, %v1540_v45  ;;  %v1891_v45 = vld [vmem:[%s3234_s4 + $0x120] sm:$0xff] }
 0xacf   :  { %v3123_v18 = vadd.f32 %v1544_v30, %v1539_v39  ;;  %v1890_v30 = vld [vmem:[%s3234_s4 + $0x118] sm:$0xff]  ;;  %v2365_v39 = vpack.c.bf16 %v1892_v53, %v1891_v45 }
 0xad0   :  { %v1550_v19 = vsel %vm32_vm0, %v3121_v11, 0.0  ;;  %v1556_v29 = vmul.f32 %v3121_v11, %v3121_v11  ;;  %v2361_v49 = vpack.c.bf16 %v1890_v30, %v1889_v2 }
 0xad1   :  { %1551 = vadd.xlane.f32.xlu1 %v1550_v19  ;;  %v1547_v4 = vsel %vm32_vm0, %v3123_v18, 0.0  ;;  %v1555_v21 = vmul.f32 %v3123_v18, %v3123_v18  ;;  %v1893_v19 = vld [vmem:[%s3234_s4 + $0x130] sm:$0xff] }
 0xad2   :  { %1548 = vadd.xlane.f32.xlu0 %v1547_v4  ;;  %v1560_v22 = vsel %vm32_vm0, %v1556_v29, 0.0  ;;  %2362 = vmatprep.subr.bf16.mxu0 %v2361_v49  ;;  %v1894_v29 = vld [vmem:[%s3234_s4 + $0x138] sm:$0xff] }
 0xad3   :  { %v1557_v40 = vsel %vm32_vm0, %v1555_v21, 0.0  ;;  %2364 = vmatpush3.bf16.msra.mxu0 %v2361_v49  ;;  %v2369_v4 = vpack.c.bf16 %v1894_v29, %v1893_v19  ;;  %v1895_v21 = vld [vmem:[%s3234_s4 + $0x140] sm:$0xff] }
 0xad4   :  { %2366 = vmatprep.subr.bf16.mxu0 %v2365_v39 }
 0xad5   :  { %1561 = vadd.xlane.f32.xlu1 %v1560_v22  ;;  %v1896_v22 = vld [vmem:[%s3234_s4 + $0x148] sm:$0xff] }
 0xad6   :  { %1558 = vadd.xlane.f32.xlu0 %v1557_v40  ;;  %v2373_v40 = vpack.c.bf16 %v1896_v22, %v1895_v21 }
 0xad7   :  { %2368 = vmatpush3.bf16.msra.mxu0 %v2365_v39 }
 0xad8   :  { %2370 = vmatprep.subr.bf16.mxu0 %v2369_v4 }
 0xadb   :  { %2372 = vmatpush3.bf16.msra.mxu0 %v2369_v4 }
 0xadc   :  { %2374 = vmatprep.subr.bf16.mxu0 %v2373_v40 }
 0xadf   :  { %2376 = vmatpush3.bf16.msra.mxu0 %v2373_v40 }
 0xae6   :  { %702 = vrot.lane.b32.xlu1 %v695_v6, %s2503_s27 }
 0xaea   :  { %1439 = vrot.lane.b32.xlu1 %v1433_v56, %s2504_s28 }
 0xaec   :  { %700 = vrot.lane.b32.xlu0 %v694_v51, %s2503_s27 }
 0xaee   :  { %1441 = vrot.lane.b32.xlu1 %v1434_v57, %s2504_s28 }
 0xb5e   :  { %v1552_v13 = vpop.xlane.xlu1 %1551 }
 0xb5f   :  { %v1554_v59 = vmul.f32 0.03125, %v1552_v13  ;;  %v1549_v54 = vpop.xlane.xlu0 %1548 }
 0xb60   :  { %v1553_v55 = vmul.f32 0.03125, %v1549_v54 }
 0xb61   :  { %v1566_v61 = vmul.f32 %v1554_v59, %v1554_v59  ;;  %v1570_v33 = vsub.f32 %v3121_v11, %v1554_v59 }
 0xb62   :  { %v1562_v58 = vpop.xlane.xlu1 %1561  ;;  %v1565_v14 = vmul.f32 %v1553_v55, %v1553_v55  ;;  %v1569_v5 = vsub.f32 %v3123_v18, %v1553_v55 }
 0xb63   :  { %v1564_v8 = vmul.f32 0.03125, %v1562_v58  ;;  %v1559_v9 = vpop.xlane.xlu0 %1558 }
 0xb64   :  { %v1563_v10 = vmul.f32 0.03125, %v1559_v9 }
 0xb65   :  { %v1568_v15 = vsub.f32 %v1564_v8, %v1566_v61 }
 0xb66   :  { %v1567_v26 = vsub.f32 %v1563_v10, %v1565_v14  ;;  %v703_v37 = vpop.permute.xlu1 %702 }
 0xb67   :  { %v1572_v12 = vadd.f32 1e-05, %v1568_v15  ;;  %v707_v27 = vadd.f32 %v703_v37, %v695_v6  ;;  %v701_v20 = vpop.permute.xlu0 %700  ;;  %v1897_v6 = vld [vmem:[%s3234_s4 + $0x150] sm:$0xff] }
 0xb68   :  { %v1571_v0 = vadd.f32 1e-05, %v1567_v26  ;;  %v706_v1 = vadd.f32 %v701_v20, %v694_v51 }
 0xb69   :  { %2469 = vrsqrt.f32 %v1572_v12  ;;  %1803 = vrot.lane.b32.xlu1 %v707_v27, %s2505_s2 }
 0xb6a   :  { %2471 = vrsqrt.f32 %v1571_v0  ;;  %v1440_v32 = vpop.permute.xlu1 %1439  ;;  %1801 = vrot.lane.b32.xlu0 %v706_v1, %s2505_s2 }
 0xb6b   :  { %v1445_v23 = vadd.f32 %v1440_v32, %v1433_v56  ;;  %v1898_v56 = vld [vmem:[%s3234_s4 + $0x158] sm:$0xff] }
 0xb6c   :  { %v2377_v51 = vpack.c.bf16 %v1898_v56, %v1897_v6 }
 0xb6e   :  { %v1442_v46 = vpop.permute.xlu1 %1441  ;;  %1809 = vrot.lane.b32.xlu0 %v1445_v23, %s2506_s13  ;;  %2378 = vmatprep.subr.bf16.mxu0 %v2377_v51 }
 0xb6f   :  { %v1446_v7 = vadd.f32 %v1442_v46, %v1434_v57  ;;  %2380 = vmatpush3.bf16.msra.mxu0 %v2377_v51  ;;  %v1899_v57 = vld [vmem:[%s3234_s4 + $0x160] sm:$0xff] }
 0xb70   :  { %v2381_v60 = vpack.c.bf16 %v1900_v34, %v1899_v57 }
 0xb71   :  { %1811 = vrot.lane.b32.xlu1 %v1446_v7, %s2506_s13  ;;  %v25_v7 = vld [vmem:[%s3235_s5 + $0x8] sm:$0x3]  ;;  %s2478_s5 = scalar_lea.vmem %s1831_s21, 256 }
 0xb72   :  { %2382 = vmatprep.subr.bf16.mxu0 %v2381_v60  ;;  %v1796_v25 = vrot.slane %v25_v7, %v2605_v43  ;;  %p2479_p0 = scmp.ne.s32.totalorder %s1831_s21, %s2478_s5  ;;  %p2484_p2 = scmp.lt.s32.totalorder %s2478_s5, %s2478_s5 }
 0xb73   :  { %v2470_v17 = vpop.eup %2469  ;;  %2384 = vmatpush3.bf16.msra.mxu0 %v2381_v60 }
 0xb74   :  { %v2472_v38 = vpop.eup %2471  ;;  %v1576_v62 = vmul.f32 %v2470_v17, %v1570_v33  ;;  %2386 = vmatprep.subr.bf16.mxu0 %v2385_v63  ;;  %p2485_p3 = por %p2484_p2, %p2483_p1 }
 0xb75   :  { %v1575_v50 = vmul.f32 %v2472_v38, %v1569_v5 }
 0xb76   :  { %v1582_v3 = vmul.f32 %v1580_v41, %v1576_v62  ;;  %p2486_p4 = pnand %p2485_p3, %p2479_p0 }
 0xb77   :  { %v1581_v52 = vmul.f32 %v1580_v41, %v1575_v50  ;;  %2388 = vmatpush3.bf16.msra.mxu0 %v2385_v63 }
 0xb78   :  { %v1588_v44 = vadd.f32 %v1586_v16, %v1582_v3 }
 0xb79   :  { %v1587_v24 = vadd.f32 %v1586_v16, %v1581_v52 }
 0xb7b   :  { %2191 = vmatprep.mubr.msk.f32.mxu1 %vm32_vm0, %v1587_v24 }
 0xb7c   :  { %2192 = vmatmul.mubr.msk.f32.vlgmr.msra.gmra.mrb[22].mxu1 %vm32_vm0, %v1588_v44 }
 0xbdb   :  { %v1804_v17 = vpop.permute.xlu1 %1803 }
 0xbdc   :  { %v1802_v33 = vpop.permute.xlu0 %1801 }
 0xbe0   :  { %v1810_v24 = vpop.permute.xlu0 %1809 }
 0xbe3   :  { %v1812_v3 = vpop.permute.xlu1 %1811 }
 0xc4f   :  { %v2193_v13 = vpop.f32.mrb[22].mxu1 }
 0xc50   :  { %v1678_v59 = vadd.f32 %v2193_v13, %v1884_v48  ;;  %v1672_v54 = vpop.f32.mrb[23].mxu1 }
 0xc51   :  { %v1673_v55 = vadd.f32 %v1884_v48, %v1672_v54 }
 0xc52   :  { %v1682_v58 = vmul.f32 %v1678_v59, %v1678_v59 }
 0xc53   :  { %v1681_v61 = vmul.f32 %v1673_v55, %v1673_v55 }
 0xc54   :  { %v1684_v8 = vmul.f32 %v1682_v58, %v1678_v59 }
 0xc55   :  { %v1683_v9 = vmul.f32 %v1681_v61, %v1673_v55 }
 0xc56   :  { %v1686_v14 = vmul.f32 0.044715, %v1684_v8 }
 0xc57   :  { %v1685_v10 = vmul.f32 0.044715, %v1683_v9 }
 0xc58   :  { %v1688_v15 = vadd.f32 %v1686_v14, %v1678_v59 }
 0xc59   :  { %v1687_v26 = vadd.f32 %v1685_v10, %v1673_v55 }
 0xc5a   :  { %v1690_v37 = vmul.f32 0.7978846, %v1688_v15 }
 0xc5b   :  { %v1689_v12 = vmul.f32 0.7978846, %v1687_v26 }
 0xc5c   :  { %2473 = vtanh.f32 %v1690_v37 }
 0xc5d   :  { %2475 = vtanh.f32 %v1689_v12 }
 0xc66   :  { %v2474_v27 = vpop.eup %2473 }
 0xc67   :  { %v2476_v20 = vpop.eup %2475  ;;  %v1694_v0 = vadd.f32 1.0, %v2474_v27 }
 0xc68   :  { %v1693_v1 = vadd.f32 1.0, %v2476_v20 }
 0xc69   :  { %v1696_v32 = vmul.f32 0.5, %v1694_v0 }
 0xc6a   :  { %v1695_v23 = vmul.f32 0.5, %v1693_v1 }
 0xc6b   :  { %v1698_v36 = vmul.f32 %v1696_v32, %v1678_v59 }
 0xc6c   :  { %v1697_v46 = vmul.f32 %v1695_v23, %v1673_v55 }
 0xc6e   :  { %2226 = vmatprep.mubr.f32.mxu0 %v1697_v46 }
 0xc6f   :  { %2227 = vmatmul.mubr.f32.vlgmr.msra.gmra.mrb[30].mxu0 %v1698_v36 }
 0xd42   :  { %v2228_v41 = vpop.f32.mrb[30].mxu0 }
 0xd43   :  { %v1792_v5 = vadd.f32 %v2228_v41, %v3121_v11  ;;  %v1782_v38 = vpop.f32.mrb[31].mxu0 }
 0xd44   :  { %v1791_v62 = vadd.f32 %v1782_v38, %v3123_v18 }
 0xd45   :  { %v1798_v50 = vadd.f32 %v1796_v25, %v1792_v5 }
 0xd46   :  { %v1797_v16 = vadd.f32 %v1796_v25, %v1791_v62 }
 0xd47   :  { %v1816_v52 = vsel %vm32_vm0, %v1798_v50, %v1804_v17 }
 0xd48   :  { %v1819_v44 = vsel %vm1817_vm11, %v1816_v52, %v1812_v3  ;;  %v1815_v43 = vsel %vm32_vm0, %v1797_v16, %v1802_v33 }
 0xd49   :  { %v1818_v42 = vsel %vm1817_vm11, %v1815_v43, %v1810_v24  ;;  %v1822_v28 = vsel %vm1820_vm12, %v1819_v44, 0.0 }
 0xd4a   :  { %v1821_v11 = vsel %vm1820_vm12, %v1818_v42, 0.0  ;;  %1824 = vst [vmem:[#allocation2 + $0x8] sm:$0xff] %v1822_v28 }
 0xd4b   :  { %1823 = vst [vmem:[#allocation2] sm:$0xff] %v1821_v11 }
 0xd4c   :  { %2489 = shalt.err (!%p2486_p4)
}
 0xd4d   :  { %s2490_s24 = scalar_lea.hbm %s3236_s6, 256 }
 0xd4e   :  { %p2491_p5 = scmp.ne.s32.totalorder %s3236_s6, %s2490_s24  ;;  %p2494_p6 = scmp.lt.u32.totalorder %s2490_s24, %s3236_s6 }
 0xd50   :  { %p2496_p7 = pnand %p2494_p6, %p2491_p5 }
 0xd52   :  { %2499 = shalt.err (!%p2496_p7)
}
 0xd53   :  { %s2508_s28 = smov 128   ;;  %s2509_s29 = smov 8  }
 0xd54   :  { %1836 = dma.vmem_to_hbm [thread:$0]  %s1831_s21, 256, %s3236_s6, [#allocation3], %s2508_s28, %s2508_s28, %s2509_s29  }
 0xd55   :  { %2500 = dma.done.wait [#allocation3], 256  }
 0xd56   :  { %2501 = vsyncadd [#allocation3], 4294967040 }
 0xd57   :  { %1840 = vsyncpa [#allocation3], 1 }

</bundles_post_ra>
